<compile_context>
chip_gen: v6e
topology: v6e:2x2x1
jax: 0.10.0
libtpu: 0.0.40
codegen_flags: <defaults>
</compile_context>

<pallas_src>
import math

import jax
import jax.numpy as jnp
from jax.experimental import pallas as pl
from jax.experimental.pallas import tpu as pltpu

# ---------------- configuration (small, consistent with the module) ---------
B = 2            # batch
S = 8            # sequence length
E = 32           # embedding dim
H = 4            # attention heads
DH = E // H      # head dim
FF = 64          # feed-forward dim
NUM_LAYERS = 2
LN_EPS = 1e-5

W_SLAB_COLS = 3 * E + E + FF     # [Wqkv | Wo | W1] concatenated along output dim
VEC_COLS = 3 * E                 # vector-slab lane width (b_qkv is the widest row)
VEC_ROWS_PER_LAYER = 8           # b_qkv, b_o, b_1, b_2, ln1g, ln1b, ln2g, ln2b
NEG_BIG = -1e30                  # cross-batch mask (finite: avoids inf-inf NaN)


# ---------------------------- shared math ------------------------------------
def _layer_norm(x, gamma, beta):
    mean = jnp.mean(x, axis=-1, keepdims=True)
    var = jnp.mean(jnp.square(x - mean), axis=-1, keepdims=True)
    return (x - mean) * jax.lax.rsqrt(var + LN_EPS) * gamma + beta


# ---------------------------- fused kernel -----------------------------------
def fused_encoder_kernel(x_ref, biases_ref, wa_ref, w2_ref, vec_ref, out_ref):
    f32, bf16 = jnp.float32, jnp.bfloat16

    # Activations: (B*S, E), resident in VMEM for the whole stack.
    x = x_ref[...]

    # ---- graph bias -> block-diagonal (B*S, B*S) additive bias, built once ----
    # Real bias on the per-batch diagonal blocks, -1e30 elsewhere: softmax over
    # the flat key axis is then exactly the per-batch softmax (masked entries
    # underflow to 0).  Hoisted out of the layer loop, shared by all heads.
    bias = biases_ref[0] + biases_ref[1]                         # (B, S, S)
    neg = jnp.full((S, S), NEG_BIG, f32)
    rows = []
    for b in range(B):
        rows.append(jnp.concatenate(
            [bias[b] if bb == b else neg for bb in range(B)], axis=1))
    bias_bd = jnp.concatenate(rows, axis=0)                      # (B*S, B*S)
    bias_bh = jnp.broadcast_to(bias_bd[None], (H, B * S, B * S))  # hoisted

    for l in range(NUM_LAYERS):                 # static unroll (2 layers)
        # ---- per-layer params: static ref-window loads (no slab value-slicing)
        w_qkv = wa_ref[l, :, 0:3 * E]           # (E, 3E) bf16, head-major, q pre-scaled
        w_o = wa_ref[l, :, 3 * E:4 * E]         # (E, E)  bf16
        w_1 = wa_ref[l, :, 4 * E:4 * E + FF]    # (E, FF) bf16
        w_2 = w2_ref[l]                         # (FF, E) bf16
        r = l * VEC_ROWS_PER_LAYER
        b_qkv = vec_ref[r + 0:r + 1, 0:3 * E]   # (1, 3E) f32 (head-major, q pre-scaled)
        b_o = vec_ref[r + 1:r + 2, 0:E]
        b_1 = vec_ref[r + 2:r + 3, 0:FF]
        b_2 = vec_ref[r + 3:r + 4, 0:E]
        ln1_g = vec_ref[r + 4:r + 5, 0:E]
        ln1_b = vec_ref[r + 5:r + 6, 0:E]
        ln2_g = vec_ref[r + 6:r + 7, 0:E]
        ln2_b = vec_ref[r + 7:r + 8, 0:E]

        # ---- fused QKV projection: one MXU push, bf16 operands, f32 accumulate
        qkv = jnp.dot(x.astype(bf16), w_qkv, preferred_element_type=f32) + b_qkv
        qkv = qkv.astype(bf16)                  # (B*S, 3E), head-major lane layout

        # ---- head split: H contiguous 3*DH-lane chunks -> (H, B*S, 3*DH) ------
        qkvh = jnp.stack(
            [qkv[:, h * 3 * DH:(h + 1) * 3 * DH] for h in range(H)], axis=0)
        q = qkvh[:, :, 0:DH]                    # 1/sqrt(DH) already folded into Wq
        k = qkvh[:, :, DH:2 * DH]
        v = qkvh[:, :, 2 * DH:3 * DH]

        # ---- attention, head-batched over the flat (B*S) row axis -------------
        scores = jnp.einsum('nqd,nkd->nqk', q, k,
                            preferred_element_type=f32)          # (H, B*S, B*S)
        scores = scores + bias_bh
        scores = scores - jnp.max(scores, axis=-1, keepdims=True)
        p = jnp.exp(scores)
        # approx reciprocal -> EUP slot; ~1e-3 rel error, fine for softmax
        p = p * pl.reciprocal(jnp.sum(p, axis=-1, keepdims=True), approx=True)
        ctx = jnp.einsum('nqk,nkd->nqd', p.astype(bf16), v,
                         preferred_element_type=f32)             # (H, B*S, DH)

        # ---- merge heads (one lane concat) + single out-projection MXU push ---
        ctx2d = jnp.concatenate([ctx[h] for h in range(H)], axis=1)  # (B*S, E)
        attn = jnp.dot(ctx2d.astype(bf16), w_o,
                       preferred_element_type=f32) + b_o

        # ---- residual + LN, FFN, residual + LN (elementwise math in f32) ------
        x = _layer_norm(x + attn, ln1_g, ln1_b)
        hdn = jnp.maximum(
            jnp.dot(x.astype(bf16), w_1, preferred_element_type=f32) + b_1, 0.0)
        ff = jnp.dot(hdn.astype(bf16), w_2, preferred_element_type=f32) + b_2
        x = _layer_norm(x + ff, ln2_g, ln2_b)

    # ---- final stack LayerNorm (params folded into the vec slab) --------------
    fr = NUM_LAYERS * VEC_ROWS_PER_LAYER
    x = _layer_norm(x, vec_ref[fr:fr + 1, 0:E], vec_ref[fr + 1:fr + 2, 0:E])
    out_ref[...] = x


# ---------------------------- wrapper -----------------------------------------
@jax.jit
def custom_transformer_encoder(src, spatial_bias, directional_bias, wa, w2, vec):
    """Mirrors CustomTransformerEncoder.forward (2 layers + final norm) in one
    fused, grid-less pallas_call.  Params must be packed with pack_params()."""
    b, s, e = src.shape
    biases = jnp.stack([spatial_bias, directional_bias], axis=0)   # (2, B, S, S)
    vmem = pl.BlockSpec(memory_space=pltpu.MemorySpace.VMEM)
    out = pl.pallas_call(
        fused_encoder_kernel,
        out_shape=jax.ShapeDtypeStruct((b * s, e), jnp.float32),
        in_specs=[vmem] * 5,
        out_specs=vmem,
    )(src.reshape(b * s, e), biases, wa, w2, vec)
    return out.reshape(b, s, e)


# ---------------------------- param init & packing -----------------------------
def make_layer_params(key):
    ks = jax.random.split(key, 8)

    def lin(k, din, dout):
        lim = 1.0 / math.sqrt(din)
        kw, kb = jax.random.split(k)
        w = jax.random.uniform(kw, (din, dout), jnp.float32, -lim, lim)
        b = jax.random.uniform(kb, (1, dout), jnp.float32, -lim, lim)
        return w, b

    wq, bq = lin(ks[0], E, E)
    wk, bk = lin(ks[1], E, E)
    wv, bv = lin(ks[2], E, E)
    wo, bo = lin(ks[3], E, E)
    w1, b1 = lin(ks[4], E, FF)
    w2, b2 = lin(ks[5], FF, E)
    ln1g = jnp.ones((1, E), jnp.float32)
    ln1b = jnp.zeros((1, E), jnp.float32)
    ln2g = jnp.ones((1, E), jnp.float32)
    ln2b = jnp.zeros((1, E), jnp.float32)
    return (wq, bq, wk, bk, wv, bv, wo, bo,
            w1, b1, w2, b2, ln1g, ln1b, ln2g, ln2b)


def pack_params(layer_params, norm_params):
    """Pack per-layer params into 3 slabs:
       wa:  (L, E, 3E+E+FF) bf16  = [Wqkv(head-major, q pre-scaled) | Wo | W1]
       w2:  (L, FF, E)      bf16
       vec: (L*8+2, 3E)     f32   rows per layer: b_qkv, b_o, b_1, b_2,
                                  ln1g, ln1b, ln2g, ln2b; then final-norm g, b.
    """
    scale = 1.0 / math.sqrt(DH)

    def pad_row(v):
        return jnp.pad(v, ((0, 0), (0, VEC_COLS - v.shape[1])))

    was, w2s, vec_rows = [], [], []
    for (wq, bq, wk, bk, wv, bv, wo, bo,
         w1, b1, w2, b2, g1, be1, g2, be2) in layer_params:
        wq_s, bq_s = wq * scale, bq * scale          # fold 1/sqrt(DH) into Q once
        wblocks, bblocks = [], []
        for h in range(H):                            # head-major: [q_h|k_h|v_h]
            sl = slice(h * DH, (h + 1) * DH)
            wblocks += [wq_s[:, sl], wk[:, sl], wv[:, sl]]
            bblocks += [bq_s[:, sl], bk[:, sl], bv[:, sl]]
        w_qkv = jnp.concatenate(wblocks, axis=1)      # (E, 3E)
        b_qkv = jnp.concatenate(bblocks, axis=1)      # (1, 3E)
        was.append(jnp.concatenate([w_qkv, wo, w1], axis=1).astype(jnp.bfloat16))
        w2s.append(w2.astype(jnp.bfloat16))
        vec_rows += [pad_row(b_qkv), pad_row(bo), pad_row(b1), pad_row(b2),
                     pad_row(g1), pad_row(be1), pad_row(g2), pad_row(be2)]
    gamma, beta = norm_params
    vec_rows += [pad_row(gamma), pad_row(beta)]
    wa = jnp.stack(was, axis=0)                       # (L, E, 192) bf16
    w2 = jnp.stack(w2s, axis=0)                       # (L, FF, E) bf16
    vec = jnp.concatenate(vec_rows, axis=0)           # (L*8+2, 96) f32
    return wa, w2, vec


# ---------------------------- pure-JAX reference --------------------------------
def reference_forward(src, spatial_bias, directional_bias, layer_params,
                      norm_params):
    x = src
    bias = (spatial_bias + directional_bias)[:, None, :, :]      # (B,1,S,S)
    for (wq, bq, wk, bk, wv, bv, wo, bo,
         w1, b1, w2, b2, g1, be1, g2, be2) in layer_params:
        q = x @ wq + bq
        k = x @ wk + bk
        v = x @ wv + bv

        def split(t):
            return t.reshape(B, S, H, DH).transpose(0, 2, 1, 3)

        qh, kh, vh = split(q), split(k), split(v)
        s = jnp.einsum('bhsd,bhtd->bhst', qh, kh) / math.sqrt(DH) + bias
        p = jax.nn.softmax(s, axis=-1)
        ctx = jnp.einsum('bhst,bhtd->bhsd', p, vh)
        ctx = ctx.transpose(0, 2, 1, 3).reshape(B, S, E)
        attn = ctx @ wo + bo
        x = _layer_norm(x + attn, g1, be1)
        ff = jnp.maximum(x @ w1 + b1, 0.0) @ w2 + b2
        x = _layer_norm(x + ff, g2, be2)
    gamma, beta = norm_params
    return _layer_norm(x, gamma, beta)


# ---------------------------- main ----------------------------------------------
if __name__ == "__main__":
    key = jax.random.PRNGKey(0)
    k_src, k_sb, k_db, k_layers = jax.random.split(key, 4)

    src = jax.random.normal(k_src, (B, S, E), jnp.float32)
    spatial_bias = 0.1 * jax.random.normal(k_sb, (B, S, S), jnp.float32)
    directional_bias = 0.1 * jax.random.normal(k_db, (B, S, S), jnp.float32)

    layer_keys = jax.random.split(k_layers, NUM_LAYERS)
    layer_params = [make_layer_params(k) for k in layer_keys]
    norm_params = (jnp.ones((1, E), jnp.float32), jnp.zeros((1, E), jnp.float32))

    wa, w2, vec = pack_params(layer_params, norm_params)

    out = custom_transformer_encoder(src, spatial_bias, directional_bias,
                                     wa, w2, vec)
    out = jax.block_until_ready(out)

    ref = reference_forward(src, spatial_bias, directional_bias,
                            layer_params, norm_params)

    assert out.shape == (B, S, E)
    assert bool(jnp.all(jnp.isfinite(out)))
    max_err = float(jnp.max(jnp.abs(out - ref)))
    assert bool(jnp.allclose(out, ref, rtol=2e-2, atol=2e-2)), max_err
    print("KERNEL_OK")
</pallas_src>

<mosaic_0001>
module attributes {stable_mosaic.version = 11 : i64} {
  func.func @fused_encoder_kernel(%arg0: memref<16x32xf32, #tpu.memory_space<vmem>>, %arg1: memref<2x2x8x8xf32, #tpu.memory_space<vmem>>, %arg2: memref<2x32x192xbf16, #tpu.memory_space<vmem>>, %arg3: memref<2x64x32xbf16, #tpu.memory_space<vmem>>, %arg4: memref<18x96xf32, #tpu.memory_space<vmem>>, %arg5: memref<16x32xf32, #tpu.memory_space<vmem>>) attributes {dimension_semantics = [], scalar_prefetch = 0 : i64, scratch_operands = 0 : i64, tpu.core_type = #tpu.core_type<tc>} {
    %c0 = arith.constant 0 : index
    %c0_0 = arith.constant 0 : index
    %0 = vector.load %arg0[%c0, %c0_0] : memref<16x32xf32, #tpu.memory_space<vmem>>, vector<16x32xf32>
    %c0_1 = arith.constant 0 : index
    %c0_2 = arith.constant 0 : index
    %c0_3 = arith.constant 0 : index
    %c0_4 = arith.constant 0 : index
    %1 = vector.load %arg1[%c0_1, %c0_2, %c0_3, %c0_4] : memref<2x2x8x8xf32, #tpu.memory_space<vmem>>, vector<1x2x8x8xf32>
    %2 = vector.shape_cast %1 : vector<1x2x8x8xf32> to vector<2x8x8xf32>
    %c1 = arith.constant 1 : index
    %c0_5 = arith.constant 0 : index
    %c0_6 = arith.constant 0 : index
    %c0_7 = arith.constant 0 : index
    %3 = vector.load %arg1[%c1, %c0_5, %c0_6, %c0_7] : memref<2x2x8x8xf32, #tpu.memory_space<vmem>>, vector<1x2x8x8xf32>
    %4 = vector.shape_cast %3 : vector<1x2x8x8xf32> to vector<2x8x8xf32>
    %5 = arith.addf %2, %4 : vector<2x8x8xf32>
    %cst = arith.constant -1.000000e+30 : f32
    %6 = vector.broadcast %cst : f32 to vector<8x8xf32>
    %7 = vector.extract_strided_slice %5 {offsets = [0, 0, 0], sizes = [1, 8, 8], strides = [1, 1, 1]} : vector<2x8x8xf32> to vector<1x8x8xf32>
    %8 = vector.shape_cast %7 : vector<1x8x8xf32> to vector<8x8xf32>
    %9 = tpu.concatenate %8, %6 in 1 : vector<8x8xf32>, vector<8x8xf32> -> vector<8x16xf32>
    %10 = vector.extract_strided_slice %5 {offsets = [1, 0, 0], sizes = [1, 8, 8], strides = [1, 1, 1]} : vector<2x8x8xf32> to vector<1x8x8xf32>
    %11 = vector.shape_cast %10 : vector<1x8x8xf32> to vector<8x8xf32>
    %12 = tpu.concatenate %6, %11 in 1 : vector<8x8xf32>, vector<8x8xf32> -> vector<8x16xf32>
    %13 = tpu.concatenate %9, %12 in 0 : vector<8x16xf32>, vector<8x16xf32> -> vector<16x16xf32>
    %14 = vector.shape_cast %13 : vector<16x16xf32> to vector<1x16x16xf32>
    %15 = vector.shape_cast %14 : vector<1x16x16xf32> to vector<1x16x16xf32>
    %16 = vector.broadcast %15 : vector<1x16x16xf32> to vector<4x16x16xf32>
    %c0_8 = arith.constant 0 : index
    %c0_9 = arith.constant 0 : index
    %c0_10 = arith.constant 0 : index
    %17 = vector.load %arg2[%c0_8, %c0_9, %c0_10] : memref<2x32x192xbf16, #tpu.memory_space<vmem>>, vector<1x32x96xbf16>
    %18 = vector.shape_cast %17 : vector<1x32x96xbf16> to vector<32x96xbf16>
    %c0_11 = arith.constant 0 : index
    %c0_12 = arith.constant 0 : index
    %c96 = arith.constant 96 : index
    %19 = vector.load %arg2[%c0_11, %c0_12, %c96] : memref<2x32x192xbf16, #tpu.memory_space<vmem>>, vector<1x32x32xbf16>
    %20 = vector.shape_cast %19 : vector<1x32x32xbf16> to vector<32x32xbf16>
    %c0_13 = arith.constant 0 : index
    %c0_14 = arith.constant 0 : index
    %c128 = arith.constant 128 : index
    %21 = vector.load %arg2[%c0_13, %c0_14, %c128] : memref<2x32x192xbf16, #tpu.memory_space<vmem>>, vector<1x32x64xbf16>
    %22 = vector.shape_cast %21 : vector<1x32x64xbf16> to vector<32x64xbf16>
    %c0_15 = arith.constant 0 : index
    %c0_16 = arith.constant 0 : index
    %c0_17 = arith.constant 0 : index
    %23 = vector.load %arg3[%c0_15, %c0_16, %c0_17] : memref<2x64x32xbf16, #tpu.memory_space<vmem>>, vector<1x64x32xbf16>
    %24 = vector.shape_cast %23 : vector<1x64x32xbf16> to vector<64x32xbf16>
    %c0_18 = arith.constant 0 : index
    %c0_19 = arith.constant 0 : index
    %25 = vector.load %arg4[%c0_18, %c0_19] : memref<18x96xf32, #tpu.memory_space<vmem>>, vector<1x96xf32>
    %c1_20 = arith.constant 1 : index
    %c0_21 = arith.constant 0 : index
    %26 = vector.load %arg4[%c1_20, %c0_21] : memref<18x96xf32, #tpu.memory_space<vmem>>, vector<1x32xf32>
    %c2 = arith.constant 2 : index
    %c0_22 = arith.constant 0 : index
    %27 = vector.load %arg4[%c2, %c0_22] : memref<18x96xf32, #tpu.memory_space<vmem>>, vector<1x64xf32>
    %c3 = arith.constant 3 : index
    %c0_23 = arith.constant 0 : index
    %28 = vector.load %arg4[%c3, %c0_23] : memref<18x96xf32, #tpu.memory_space<vmem>>, vector<1x32xf32>
    %c4 = arith.constant 4 : index
    %c0_24 = arith.constant 0 : index
    %29 = vector.load %arg4[%c4, %c0_24] : memref<18x96xf32, #tpu.memory_space<vmem>>, vector<1x32xf32>
    %c5 = arith.constant 5 : index
    %c0_25 = arith.constant 0 : index
    %30 = vector.load %arg4[%c5, %c0_25] : memref<18x96xf32, #tpu.memory_space<vmem>>, vector<1x32xf32>
    %c6 = arith.constant 6 : index
    %c0_26 = arith.constant 0 : index
    %31 = vector.load %arg4[%c6, %c0_26] : memref<18x96xf32, #tpu.memory_space<vmem>>, vector<1x32xf32>
    %c7 = arith.constant 7 : index
    %c0_27 = arith.constant 0 : index
    %32 = vector.load %arg4[%c7, %c0_27] : memref<18x96xf32, #tpu.memory_space<vmem>>, vector<1x32xf32>
    %33 = arith.truncf %0 : vector<16x32xf32> to vector<16x32xbf16>
    %cst_28 = arith.constant dense<0.000000e+00> : vector<16x96xf32>
    %34 = tpu.matmul %33, %18, %cst_28 {dimension_numbers = #tpu.dot_dimension_numbers<[1], [0], [0], [1], [0, 0, 1, 1], [], []>} : vector<16x32xbf16>, vector<32x96xbf16>, vector<16x96xf32> -> vector<16x96xf32>
    %35 = vector.broadcast %25 : vector<1x96xf32> to vector<16x96xf32>
    %36 = arith.addf %34, %35 : vector<16x96xf32>
    %37 = arith.truncf %36 : vector<16x96xf32> to vector<16x96xbf16>
    %38 = vector.extract_strided_slice %37 {offsets = [0, 0], sizes = [16, 24], strides = [1, 1]} : vector<16x96xbf16> to vector<16x24xbf16>
    %39 = vector.extract_strided_slice %37 {offsets = [0, 24], sizes = [16, 24], strides = [1, 1]} : vector<16x96xbf16> to vector<16x24xbf16>
    %40 = vector.extract_strided_slice %37 {offsets = [0, 48], sizes = [16, 24], strides = [1, 1]} : vector<16x96xbf16> to vector<16x24xbf16>
    %41 = vector.extract_strided_slice %37 {offsets = [0, 72], sizes = [16, 24], strides = [1, 1]} : vector<16x96xbf16> to vector<16x24xbf16>
    %42 = vector.shape_cast %38 : vector<16x24xbf16> to vector<1x16x24xbf16>
    %43 = vector.shape_cast %39 : vector<16x24xbf16> to vector<1x16x24xbf16>
    %44 = vector.shape_cast %40 : vector<16x24xbf16> to vector<1x16x24xbf16>
    %45 = vector.shape_cast %41 : vector<16x24xbf16> to vector<1x16x24xbf16>
    %46 = tpu.concatenate %42, %43, %44, %45 in 0 : vector<1x16x24xbf16>, vector<1x16x24xbf16>, vector<1x16x24xbf16>, vector<1x16x24xbf16> -> vector<4x16x24xbf16>
    %47 = vector.extract_strided_slice %46 {offsets = [0, 0, 0], sizes = [4, 16, 8], strides = [1, 1, 1]} : vector<4x16x24xbf16> to vector<4x16x8xbf16>
    %48 = vector.extract_strided_slice %46 {offsets = [0, 0, 8], sizes = [4, 16, 8], strides = [1, 1, 1]} : vector<4x16x24xbf16> to vector<4x16x8xbf16>
    %49 = vector.extract_strided_slice %46 {offsets = [0, 0, 16], sizes = [4, 16, 8], strides = [1, 1, 1]} : vector<4x16x24xbf16> to vector<4x16x8xbf16>
    "tpu.trace_start"() <{level = 10 : i32, message = "nqd,nkd->nqk"}> : () -> ()
    %cst_29 = arith.constant dense<0.000000e+00> : vector<4x16x16xf32>
    %50 = tpu.matmul %47, %48, %cst_29 {dimension_numbers = #tpu.dot_dimension_numbers<[2], [2], [1], [1], [0, 0, 0, 1, 1, 1], [0], [0]>} : vector<4x16x8xbf16>, vector<4x16x8xbf16>, vector<4x16x16xf32> -> vector<4x16x16xf32>
    "tpu.trace_stop"() : () -> ()
    %51 = arith.addf %50, %16 : vector<4x16x16xf32>
    %cst_30 = arith.constant dense<0xFF800000> : vector<4x16xf32>
    %52 = vector.multi_reduction <maximumf>, %51, %cst_30 [2] : vector<4x16x16xf32> to vector<4x16xf32>
    %53 = vector.shape_cast %52 : vector<4x16xf32> to vector<4x16x1xf32>
    %54 = vector.broadcast %53 : vector<4x16x1xf32> to vector<4x16x16xf32>
    %55 = arith.subf %51, %54 : vector<4x16x16xf32>
    %56 = math.exp %55 : vector<4x16x16xf32>
    %cst_31 = arith.constant dense<0.000000e+00> : vector<4x16xf32>
    %57 = vector.multi_reduction <add>, %56, %cst_31 [2] : vector<4x16x16xf32> to vector<4x16xf32>
    %58 = vector.shape_cast %57 : vector<4x16xf32> to vector<4x16x1xf32>
    %59 = tpu.reciprocal %58 {approx = true} : vector<4x16x1xf32> -> vector<4x16x1xf32>
    %60 = vector.broadcast %59 : vector<4x16x1xf32> to vector<4x16x16xf32>
    %61 = arith.mulf %56, %60 : vector<4x16x16xf32>
    %62 = arith.truncf %61 : vector<4x16x16xf32> to vector<4x16x16xbf16>
    "tpu.trace_start"() <{level = 10 : i32, message = "nqk,nkd->nqd"}> : () -> ()
    %cst_32 = arith.constant dense<0.000000e+00> : vector<4x16x8xf32>
    %63 = tpu.matmul %62, %49, %cst_32 {dimension_numbers = #tpu.dot_dimension_numbers<[2], [1], [1], [2], [0, 0, 0, 1, 1, 2], [0], [0]>} : vector<4x16x16xbf16>, vector<4x16x8xbf16>, vector<4x16x8xf32> -> vector<4x16x8xf32>
    "tpu.trace_stop"() : () -> ()
    %64 = vector.extract_strided_slice %63 {offsets = [0, 0, 0], sizes = [1, 16, 8], strides = [1, 1, 1]} : vector<4x16x8xf32> to vector<1x16x8xf32>
    %65 = vector.shape_cast %64 : vector<1x16x8xf32> to vector<16x8xf32>
    %66 = vector.extract_strided_slice %63 {offsets = [1, 0, 0], sizes = [1, 16, 8], strides = [1, 1, 1]} : vector<4x16x8xf32> to vector<1x16x8xf32>
    %67 = vector.shape_cast %66 : vector<1x16x8xf32> to vector<16x8xf32>
    %68 = vector.extract_strided_slice %63 {offsets = [2, 0, 0], sizes = [1, 16, 8], strides = [1, 1, 1]} : vector<4x16x8xf32> to vector<1x16x8xf32>
    %69 = vector.shape_cast %68 : vector<1x16x8xf32> to vector<16x8xf32>
    %70 = vector.extract_strided_slice %63 {offsets = [3, 0, 0], sizes = [1, 16, 8], strides = [1, 1, 1]} : vector<4x16x8xf32> to vector<1x16x8xf32>
    %71 = vector.shape_cast %70 : vector<1x16x8xf32> to vector<16x8xf32>
    %72 = tpu.concatenate %65, %67, %69, %71 in 1 : vector<16x8xf32>, vector<16x8xf32>, vector<16x8xf32>, vector<16x8xf32> -> vector<16x32xf32>
    %73 = arith.truncf %72 : vector<16x32xf32> to vector<16x32xbf16>
    %cst_33 = arith.constant dense<0.000000e+00> : vector<16x32xf32>
    %74 = tpu.matmul %73, %20, %cst_33 {dimension_numbers = #tpu.dot_dimension_numbers<[1], [0], [0], [1], [0, 0, 1, 1], [], []>} : vector<16x32xbf16>, vector<32x32xbf16>, vector<16x32xf32> -> vector<16x32xf32>
    %75 = vector.broadcast %26 : vector<1x32xf32> to vector<16x32xf32>
    %76 = arith.addf %74, %75 : vector<16x32xf32>
    %77 = arith.addf %0, %76 : vector<16x32xf32>
    %cst_34 = arith.constant dense<0.000000e+00> : vector<16xf32>
    %78 = vector.multi_reduction <add>, %77, %cst_34 [1] : vector<16x32xf32> to vector<16xf32>
    %79 = vector.shape_cast %78 : vector<16xf32> to vector<16x1xf32>
    %cst_35 = arith.constant 3.200000e+01 : f32
    %80 = vector.broadcast %cst_35 : f32 to vector<16x1xf32>
    %81 = arith.divf %79, %80 : vector<16x1xf32>
    %82 = vector.broadcast %81 : vector<16x1xf32> to vector<16x32xf32>
    %83 = arith.subf %77, %82 : vector<16x32xf32>
    %84 = arith.mulf %83, %83 : vector<16x32xf32>
    %cst_36 = arith.constant dense<0.000000e+00> : vector<16xf32>
    %85 = vector.multi_reduction <add>, %84, %cst_36 [1] : vector<16x32xf32> to vector<16xf32>
    %86 = vector.shape_cast %85 : vector<16xf32> to vector<16x1xf32>
    %cst_37 = arith.constant 3.200000e+01 : f32
    %87 = vector.broadcast %cst_37 : f32 to vector<16x1xf32>
    %88 = arith.divf %86, %87 : vector<16x1xf32>
    %89 = vector.broadcast %81 : vector<16x1xf32> to vector<16x32xf32>
    %90 = arith.subf %77, %89 : vector<16x32xf32>
    %cst_38 = arith.constant 9.99999974E-6 : f32
    %91 = vector.broadcast %cst_38 : f32 to vector<16x1xf32>
    %92 = arith.addf %88, %91 : vector<16x1xf32>
    %93 = math.rsqrt %92 : vector<16x1xf32>
    %94 = vector.broadcast %93 : vector<16x1xf32> to vector<16x32xf32>
    %95 = arith.mulf %90, %94 : vector<16x32xf32>
    %96 = vector.broadcast %29 : vector<1x32xf32> to vector<16x32xf32>
    %97 = arith.mulf %95, %96 : vector<16x32xf32>
    %98 = vector.broadcast %30 : vector<1x32xf32> to vector<16x32xf32>
    %99 = arith.addf %97, %98 : vector<16x32xf32>
    %100 = arith.truncf %99 : vector<16x32xf32> to vector<16x32xbf16>
    %cst_39 = arith.constant dense<0.000000e+00> : vector<16x64xf32>
    %101 = tpu.matmul %100, %22, %cst_39 {dimension_numbers = #tpu.dot_dimension_numbers<[1], [0], [0], [1], [0, 0, 1, 1], [], []>} : vector<16x32xbf16>, vector<32x64xbf16>, vector<16x64xf32> -> vector<16x64xf32>
    %102 = vector.broadcast %27 : vector<1x64xf32> to vector<16x64xf32>
    %103 = arith.addf %101, %102 : vector<16x64xf32>
    %cst_40 = arith.constant 0.000000e+00 : f32
    %104 = vector.broadcast %cst_40 : f32 to vector<16x64xf32>
    %105 = arith.maximumf %103, %104 : vector<16x64xf32>
    %106 = arith.truncf %105 : vector<16x64xf32> to vector<16x64xbf16>
    %cst_41 = arith.constant dense<0.000000e+00> : vector<16x32xf32>
    %107 = tpu.matmul %106, %24, %cst_41 {dimension_numbers = #tpu.dot_dimension_numbers<[1], [0], [0], [1], [0, 0, 1, 1], [], []>} : vector<16x64xbf16>, vector<64x32xbf16>, vector<16x32xf32> -> vector<16x32xf32>
    %108 = vector.broadcast %28 : vector<1x32xf32> to vector<16x32xf32>
    %109 = arith.addf %107, %108 : vector<16x32xf32>
    %110 = arith.addf %99, %109 : vector<16x32xf32>
    %cst_42 = arith.constant dense<0.000000e+00> : vector<16xf32>
    %111 = vector.multi_reduction <add>, %110, %cst_42 [1] : vector<16x32xf32> to vector<16xf32>
    %112 = vector.shape_cast %111 : vector<16xf32> to vector<16x1xf32>
    %cst_43 = arith.constant 3.200000e+01 : f32
    %113 = vector.broadcast %cst_43 : f32 to vector<16x1xf32>
    %114 = arith.divf %112, %113 : vector<16x1xf32>
    %115 = vector.broadcast %114 : vector<16x1xf32> to vector<16x32xf32>
    %116 = arith.subf %110, %115 : vector<16x32xf32>
    %117 = arith.mulf %116, %116 : vector<16x32xf32>
    %cst_44 = arith.constant dense<0.000000e+00> : vector<16xf32>
    %118 = vector.multi_reduction <add>, %117, %cst_44 [1] : vector<16x32xf32> to vector<16xf32>
    %119 = vector.shape_cast %118 : vector<16xf32> to vector<16x1xf32>
    %cst_45 = arith.constant 3.200000e+01 : f32
    %120 = vector.broadcast %cst_45 : f32 to vector<16x1xf32>
    %121 = arith.divf %119, %120 : vector<16x1xf32>
    %122 = vector.broadcast %114 : vector<16x1xf32> to vector<16x32xf32>
    %123 = arith.subf %110, %122 : vector<16x32xf32>
    %cst_46 = arith.constant 9.99999974E-6 : f32
    %124 = vector.broadcast %cst_46 : f32 to vector<16x1xf32>
    %125 = arith.addf %121, %124 : vector<16x1xf32>
    %126 = math.rsqrt %125 : vector<16x1xf32>
    %127 = vector.broadcast %126 : vector<16x1xf32> to vector<16x32xf32>
    %128 = arith.mulf %123, %127 : vector<16x32xf32>
    %129 = vector.broadcast %31 : vector<1x32xf32> to vector<16x32xf32>
    %130 = arith.mulf %128, %129 : vector<16x32xf32>
    %131 = vector.broadcast %32 : vector<1x32xf32> to vector<16x32xf32>
    %132 = arith.addf %130, %131 : vector<16x32xf32>
    %c1_47 = arith.constant 1 : index
    %c0_48 = arith.constant 0 : index
    %c0_49 = arith.constant 0 : index
    %133 = vector.load %arg2[%c1_47, %c0_48, %c0_49] : memref<2x32x192xbf16, #tpu.memory_space<vmem>>, vector<1x32x96xbf16>
    %134 = vector.shape_cast %133 : vector<1x32x96xbf16> to vector<32x96xbf16>
    %c1_50 = arith.constant 1 : index
    %c0_51 = arith.constant 0 : index
    %c96_52 = arith.constant 96 : index
    %135 = vector.load %arg2[%c1_50, %c0_51, %c96_52] : memref<2x32x192xbf16, #tpu.memory_space<vmem>>, vector<1x32x32xbf16>
    %136 = vector.shape_cast %135 : vector<1x32x32xbf16> to vector<32x32xbf16>
    %c1_53 = arith.constant 1 : index
    %c0_54 = arith.constant 0 : index
    %c128_55 = arith.constant 128 : index
    %137 = vector.load %arg2[%c1_53, %c0_54, %c128_55] : memref<2x32x192xbf16, #tpu.memory_space<vmem>>, vector<1x32x64xbf16>
    %138 = vector.shape_cast %137 : vector<1x32x64xbf16> to vector<32x64xbf16>
    %c1_56 = arith.constant 1 : index
    %c0_57 = arith.constant 0 : index
    %c0_58 = arith.constant 0 : index
    %139 = vector.load %arg3[%c1_56, %c0_57, %c0_58] : memref<2x64x32xbf16, #tpu.memory_space<vmem>>, vector<1x64x32xbf16>
    %140 = vector.shape_cast %139 : vector<1x64x32xbf16> to vector<64x32xbf16>
    %c8 = arith.constant 8 : index
    %c0_59 = arith.constant 0 : index
    %141 = vector.load %arg4[%c8, %c0_59] : memref<18x96xf32, #tpu.memory_space<vmem>>, vector<1x96xf32>
    %c9 = arith.constant 9 : index
    %c0_60 = arith.constant 0 : index
    %142 = vector.load %arg4[%c9, %c0_60] : memref<18x96xf32, #tpu.memory_space<vmem>>, vector<1x32xf32>
    %c10 = arith.constant 10 : index
    %c0_61 = arith.constant 0 : index
    %143 = vector.load %arg4[%c10, %c0_61] : memref<18x96xf32, #tpu.memory_space<vmem>>, vector<1x64xf32>
    %c11 = arith.constant 11 : index
    %c0_62 = arith.constant 0 : index
    %144 = vector.load %arg4[%c11, %c0_62] : memref<18x96xf32, #tpu.memory_space<vmem>>, vector<1x32xf32>
    %c12 = arith.constant 12 : index
    %c0_63 = arith.constant 0 : index
    %145 = vector.load %arg4[%c12, %c0_63] : memref<18x96xf32, #tpu.memory_space<vmem>>, vector<1x32xf32>
    %c13 = arith.constant 13 : index
    %c0_64 = arith.constant 0 : index
    %146 = vector.load %arg4[%c13, %c0_64] : memref<18x96xf32, #tpu.memory_space<vmem>>, vector<1x32xf32>
    %c14 = arith.constant 14 : index
    %c0_65 = arith.constant 0 : index
    %147 = vector.load %arg4[%c14, %c0_65] : memref<18x96xf32, #tpu.memory_space<vmem>>, vector<1x32xf32>
    %c15 = arith.constant 15 : index
    %c0_66 = arith.constant 0 : index
    %148 = vector.load %arg4[%c15, %c0_66] : memref<18x96xf32, #tpu.memory_space<vmem>>, vector<1x32xf32>
    %149 = arith.truncf %132 : vector<16x32xf32> to vector<16x32xbf16>
    %cst_67 = arith.constant dense<0.000000e+00> : vector<16x96xf32>
    %150 = tpu.matmul %149, %134, %cst_67 {dimension_numbers = #tpu.dot_dimension_numbers<[1], [0], [0], [1], [0, 0, 1, 1], [], []>} : vector<16x32xbf16>, vector<32x96xbf16>, vector<16x96xf32> -> vector<16x96xf32>
    %151 = vector.broadcast %141 : vector<1x96xf32> to vector<16x96xf32>
    %152 = arith.addf %150, %151 : vector<16x96xf32>
    %153 = arith.truncf %152 : vector<16x96xf32> to vector<16x96xbf16>
    %154 = vector.extract_strided_slice %153 {offsets = [0, 0], sizes = [16, 24], strides = [1, 1]} : vector<16x96xbf16> to vector<16x24xbf16>
    %155 = vector.extract_strided_slice %153 {offsets = [0, 24], sizes = [16, 24], strides = [1, 1]} : vector<16x96xbf16> to vector<16x24xbf16>
    %156 = vector.extract_strided_slice %153 {offsets = [0, 48], sizes = [16, 24], strides = [1, 1]} : vector<16x96xbf16> to vector<16x24xbf16>
    %157 = vector.extract_strided_slice %153 {offsets = [0, 72], sizes = [16, 24], strides = [1, 1]} : vector<16x96xbf16> to vector<16x24xbf16>
    %158 = vector.shape_cast %154 : vector<16x24xbf16> to vector<1x16x24xbf16>
    %159 = vector.shape_cast %155 : vector<16x24xbf16> to vector<1x16x24xbf16>
    %160 = vector.shape_cast %156 : vector<16x24xbf16> to vector<1x16x24xbf16>
    %161 = vector.shape_cast %157 : vector<16x24xbf16> to vector<1x16x24xbf16>
    %162 = tpu.concatenate %158, %159, %160, %161 in 0 : vector<1x16x24xbf16>, vector<1x16x24xbf16>, vector<1x16x24xbf16>, vector<1x16x24xbf16> -> vector<4x16x24xbf16>
    %163 = vector.extract_strided_slice %162 {offsets = [0, 0, 0], sizes = [4, 16, 8], strides = [1, 1, 1]} : vector<4x16x24xbf16> to vector<4x16x8xbf16>
    %164 = vector.extract_strided_slice %162 {offsets = [0, 0, 8], sizes = [4, 16, 8], strides = [1, 1, 1]} : vector<4x16x24xbf16> to vector<4x16x8xbf16>
    %165 = vector.extract_strided_slice %162 {offsets = [0, 0, 16], sizes = [4, 16, 8], strides = [1, 1, 1]} : vector<4x16x24xbf16> to vector<4x16x8xbf16>
    "tpu.trace_start"() <{level = 10 : i32, message = "nqd,nkd->nqk"}> : () -> ()
    %cst_68 = arith.constant dense<0.000000e+00> : vector<4x16x16xf32>
    %166 = tpu.matmul %163, %164, %cst_68 {dimension_numbers = #tpu.dot_dimension_numbers<[2], [2], [1], [1], [0, 0, 0, 1, 1, 1], [0], [0]>} : vector<4x16x8xbf16>, vector<4x16x8xbf16>, vector<4x16x16xf32> -> vector<4x16x16xf32>
    "tpu.trace_stop"() : () -> ()
    %167 = arith.addf %166, %16 : vector<4x16x16xf32>
    %cst_69 = arith.constant dense<0xFF800000> : vector<4x16xf32>
    %168 = vector.multi_reduction <maximumf>, %167, %cst_69 [2] : vector<4x16x16xf32> to vector<4x16xf32>
    %169 = vector.shape_cast %168 : vector<4x16xf32> to vector<4x16x1xf32>
    %170 = vector.broadcast %169 : vector<4x16x1xf32> to vector<4x16x16xf32>
    %171 = arith.subf %167, %170 : vector<4x16x16xf32>
    %172 = math.exp %171 : vector<4x16x16xf32>
    %cst_70 = arith.constant dense<0.000000e+00> : vector<4x16xf32>
    %173 = vector.multi_reduction <add>, %172, %cst_70 [2] : vector<4x16x16xf32> to vector<4x16xf32>
    %174 = vector.shape_cast %173 : vector<4x16xf32> to vector<4x16x1xf32>
    %175 = tpu.reciprocal %174 {approx = true} : vector<4x16x1xf32> -> vector<4x16x1xf32>
    %176 = vector.broadcast %175 : vector<4x16x1xf32> to vector<4x16x16xf32>
    %177 = arith.mulf %172, %176 : vector<4x16x16xf32>
    %178 = arith.truncf %177 : vector<4x16x16xf32> to vector<4x16x16xbf16>
    "tpu.trace_start"() <{level = 10 : i32, message = "nqk,nkd->nqd"}> : () -> ()
    %cst_71 = arith.constant dense<0.000000e+00> : vector<4x16x8xf32>
    %179 = tpu.matmul %178, %165, %cst_71 {dimension_numbers = #tpu.dot_dimension_numbers<[2], [1], [1], [2], [0, 0, 0, 1, 1, 2], [0], [0]>} : vector<4x16x16xbf16>, vector<4x16x8xbf16>, vector<4x16x8xf32> -> vector<4x16x8xf32>
    "tpu.trace_stop"() : () -> ()
    %180 = vector.extract_strided_slice %179 {offsets = [0, 0, 0], sizes = [1, 16, 8], strides = [1, 1, 1]} : vector<4x16x8xf32> to vector<1x16x8xf32>
    %181 = vector.shape_cast %180 : vector<1x16x8xf32> to vector<16x8xf32>
    %182 = vector.extract_strided_slice %179 {offsets = [1, 0, 0], sizes = [1, 16, 8], strides = [1, 1, 1]} : vector<4x16x8xf32> to vector<1x16x8xf32>
    %183 = vector.shape_cast %182 : vector<1x16x8xf32> to vector<16x8xf32>
    %184 = vector.extract_strided_slice %179 {offsets = [2, 0, 0], sizes = [1, 16, 8], strides = [1, 1, 1]} : vector<4x16x8xf32> to vector<1x16x8xf32>
    %185 = vector.shape_cast %184 : vector<1x16x8xf32> to vector<16x8xf32>
    %186 = vector.extract_strided_slice %179 {offsets = [3, 0, 0], sizes = [1, 16, 8], strides = [1, 1, 1]} : vector<4x16x8xf32> to vector<1x16x8xf32>
    %187 = vector.shape_cast %186 : vector<1x16x8xf32> to vector<16x8xf32>
    %188 = tpu.concatenate %181, %183, %185, %187 in 1 : vector<16x8xf32>, vector<16x8xf32>, vector<16x8xf32>, vector<16x8xf32> -> vector<16x32xf32>
    %189 = arith.truncf %188 : vector<16x32xf32> to vector<16x32xbf16>
    %cst_72 = arith.constant dense<0.000000e+00> : vector<16x32xf32>
    %190 = tpu.matmul %189, %136, %cst_72 {dimension_numbers = #tpu.dot_dimension_numbers<[1], [0], [0], [1], [0, 0, 1, 1], [], []>} : vector<16x32xbf16>, vector<32x32xbf16>, vector<16x32xf32> -> vector<16x32xf32>
    %191 = vector.broadcast %142 : vector<1x32xf32> to vector<16x32xf32>
    %192 = arith.addf %190, %191 : vector<16x32xf32>
    %193 = arith.addf %132, %192 : vector<16x32xf32>
    %cst_73 = arith.constant dense<0.000000e+00> : vector<16xf32>
    %194 = vector.multi_reduction <add>, %193, %cst_73 [1] : vector<16x32xf32> to vector<16xf32>
    %195 = vector.shape_cast %194 : vector<16xf32> to vector<16x1xf32>
    %cst_74 = arith.constant 3.200000e+01 : f32
    %196 = vector.broadcast %cst_74 : f32 to vector<16x1xf32>
    %197 = arith.divf %195, %196 : vector<16x1xf32>
    %198 = vector.broadcast %197 : vector<16x1xf32> to vector<16x32xf32>
    %199 = arith.subf %193, %198 : vector<16x32xf32>
    %200 = arith.mulf %199, %199 : vector<16x32xf32>
    %cst_75 = arith.constant dense<0.000000e+00> : vector<16xf32>
    %201 = vector.multi_reduction <add>, %200, %cst_75 [1] : vector<16x32xf32> to vector<16xf32>
    %202 = vector.shape_cast %201 : vector<16xf32> to vector<16x1xf32>
    %cst_76 = arith.constant 3.200000e+01 : f32
    %203 = vector.broadcast %cst_76 : f32 to vector<16x1xf32>
    %204 = arith.divf %202, %203 : vector<16x1xf32>
    %205 = vector.broadcast %197 : vector<16x1xf32> to vector<16x32xf32>
    %206 = arith.subf %193, %205 : vector<16x32xf32>
    %cst_77 = arith.constant 9.99999974E-6 : f32
    %207 = vector.broadcast %cst_77 : f32 to vector<16x1xf32>
    %208 = arith.addf %204, %207 : vector<16x1xf32>
    %209 = math.rsqrt %208 : vector<16x1xf32>
    %210 = vector.broadcast %209 : vector<16x1xf32> to vector<16x32xf32>
    %211 = arith.mulf %206, %210 : vector<16x32xf32>
    %212 = vector.broadcast %145 : vector<1x32xf32> to vector<16x32xf32>
    %213 = arith.mulf %211, %212 : vector<16x32xf32>
    %214 = vector.broadcast %146 : vector<1x32xf32> to vector<16x32xf32>
    %215 = arith.addf %213, %214 : vector<16x32xf32>
    %216 = arith.truncf %215 : vector<16x32xf32> to vector<16x32xbf16>
    %cst_78 = arith.constant dense<0.000000e+00> : vector<16x64xf32>
    %217 = tpu.matmul %216, %138, %cst_78 {dimension_numbers = #tpu.dot_dimension_numbers<[1], [0], [0], [1], [0, 0, 1, 1], [], []>} : vector<16x32xbf16>, vector<32x64xbf16>, vector<16x64xf32> -> vector<16x64xf32>
    %218 = vector.broadcast %143 : vector<1x64xf32> to vector<16x64xf32>
    %219 = arith.addf %217, %218 : vector<16x64xf32>
    %cst_79 = arith.constant 0.000000e+00 : f32
    %220 = vector.broadcast %cst_79 : f32 to vector<16x64xf32>
    %221 = arith.maximumf %219, %220 : vector<16x64xf32>
    %222 = arith.truncf %221 : vector<16x64xf32> to vector<16x64xbf16>
    %cst_80 = arith.constant dense<0.000000e+00> : vector<16x32xf32>
    %223 = tpu.matmul %222, %140, %cst_80 {dimension_numbers = #tpu.dot_dimension_numbers<[1], [0], [0], [1], [0, 0, 1, 1], [], []>} : vector<16x64xbf16>, vector<64x32xbf16>, vector<16x32xf32> -> vector<16x32xf32>
    %224 = vector.broadcast %144 : vector<1x32xf32> to vector<16x32xf32>
    %225 = arith.addf %223, %224 : vector<16x32xf32>
    %226 = arith.addf %215, %225 : vector<16x32xf32>
    %cst_81 = arith.constant dense<0.000000e+00> : vector<16xf32>
    %227 = vector.multi_reduction <add>, %226, %cst_81 [1] : vector<16x32xf32> to vector<16xf32>
    %228 = vector.shape_cast %227 : vector<16xf32> to vector<16x1xf32>
    %cst_82 = arith.constant 3.200000e+01 : f32
    %229 = vector.broadcast %cst_82 : f32 to vector<16x1xf32>
    %230 = arith.divf %228, %229 : vector<16x1xf32>
    %231 = vector.broadcast %230 : vector<16x1xf32> to vector<16x32xf32>
    %232 = arith.subf %226, %231 : vector<16x32xf32>
    %233 = arith.mulf %232, %232 : vector<16x32xf32>
    %cst_83 = arith.constant dense<0.000000e+00> : vector<16xf32>
    %234 = vector.multi_reduction <add>, %233, %cst_83 [1] : vector<16x32xf32> to vector<16xf32>
    %235 = vector.shape_cast %234 : vector<16xf32> to vector<16x1xf32>
    %cst_84 = arith.constant 3.200000e+01 : f32
    %236 = vector.broadcast %cst_84 : f32 to vector<16x1xf32>
    %237 = arith.divf %235, %236 : vector<16x1xf32>
    %238 = vector.broadcast %230 : vector<16x1xf32> to vector<16x32xf32>
    %239 = arith.subf %226, %238 : vector<16x32xf32>
    %cst_85 = arith.constant 9.99999974E-6 : f32
    %240 = vector.broadcast %cst_85 : f32 to vector<16x1xf32>
    %241 = arith.addf %237, %240 : vector<16x1xf32>
    %242 = math.rsqrt %241 : vector<16x1xf32>
    %243 = vector.broadcast %242 : vector<16x1xf32> to vector<16x32xf32>
    %244 = arith.mulf %239, %243 : vector<16x32xf32>
    %245 = vector.broadcast %147 : vector<1x32xf32> to vector<16x32xf32>
    %246 = arith.mulf %244, %245 : vector<16x32xf32>
    %247 = vector.broadcast %148 : vector<1x32xf32> to vector<16x32xf32>
    %248 = arith.addf %246, %247 : vector<16x32xf32>
    %c16 = arith.constant 16 : index
    %c0_86 = arith.constant 0 : index
    %249 = vector.load %arg4[%c16, %c0_86] : memref<18x96xf32, #tpu.memory_space<vmem>>, vector<1x32xf32>
    %c17 = arith.constant 17 : index
    %c0_87 = arith.constant 0 : index
    %250 = vector.load %arg4[%c17, %c0_87] : memref<18x96xf32, #tpu.memory_space<vmem>>, vector<1x32xf32>
    %cst_88 = arith.constant dense<0.000000e+00> : vector<16xf32>
    %251 = vector.multi_reduction <add>, %248, %cst_88 [1] : vector<16x32xf32> to vector<16xf32>
    %252 = vector.shape_cast %251 : vector<16xf32> to vector<16x1xf32>
    %cst_89 = arith.constant 3.200000e+01 : f32
    %253 = vector.broadcast %cst_89 : f32 to vector<16x1xf32>
    %254 = arith.divf %252, %253 : vector<16x1xf32>
    %255 = vector.broadcast %254 : vector<16x1xf32> to vector<16x32xf32>
    %256 = arith.subf %248, %255 : vector<16x32xf32>
    %257 = arith.mulf %256, %256 : vector<16x32xf32>
    %cst_90 = arith.constant dense<0.000000e+00> : vector<16xf32>
    %258 = vector.multi_reduction <add>, %257, %cst_90 [1] : vector<16x32xf32> to vector<16xf32>
    %259 = vector.shape_cast %258 : vector<16xf32> to vector<16x1xf32>
    %cst_91 = arith.constant 3.200000e+01 : f32
    %260 = vector.broadcast %cst_91 : f32 to vector<16x1xf32>
    %261 = arith.divf %259, %260 : vector<16x1xf32>
    %262 = vector.broadcast %254 : vector<16x1xf32> to vector<16x32xf32>
    %263 = arith.subf %248, %262 : vector<16x32xf32>
    %cst_92 = arith.constant 9.99999974E-6 : f32
    %264 = vector.broadcast %cst_92 : f32 to vector<16x1xf32>
    %265 = arith.addf %261, %264 : vector<16x1xf32>
    %266 = math.rsqrt %265 : vector<16x1xf32>
    %267 = vector.broadcast %266 : vector<16x1xf32> to vector<16x32xf32>
    %268 = arith.mulf %263, %267 : vector<16x32xf32>
    %269 = vector.broadcast %249 : vector<1x32xf32> to vector<16x32xf32>
    %270 = arith.mulf %268, %269 : vector<16x32xf32>
    %271 = vector.broadcast %250 : vector<1x32xf32> to vector<16x32xf32>
    %272 = arith.addf %270, %271 : vector<16x32xf32>
    %c0_93 = arith.constant 0 : index
    %c0_94 = arith.constant 0 : index
    %273 = vector.load %arg5[%c0_93, %c0_94] : memref<16x32xf32, #tpu.memory_space<vmem>>, vector<16x32xf32>
    tpu.vector_store %arg5[%c0_93, %c0_94], %272 {strides = array<i32>} : memref<16x32xf32, #tpu.memory_space<vmem>>, vector<16x32xf32>,
    return
  }
}

</mosaic_0001>

<bundles_post_ra>
// kernel: custom_transformer_encoder.1
= control target key start
LH: loop header
LB: loop body
LE: loop exit
PB: predicated region body
PF: predicated region fallthrough
CT: control target
= control target key end

     0   :  { %v2312_v0 = vmov 0.0   ;;  %vm2313_vm0 = vmmov 0   ;;  %vm79_vm1 = vcmask 261120   ;;  %s2794_s0 = inlined_call_operand.vmem [shape: f32[16,32], index: 0, kind: input, shape index: {}]   ;;  %s2795_s1 = inlined_call_operand.vmem [shape: f32[2,2,8,8], index: 1, kind: input, shape index: {}]   ;;  %s2796_s2 = inlined_call_operand.vmem [shape: bf16[2,32,192], index: 2, kind: input, shape index: {}]   ;;  %s2797_s3 = inlined_call_operand.vmem [shape: bf16[2,64,32], index: 3, kind: input, shape index: {}]   ;;  %s2798_s4 = inlined_call_operand.vmem [shape: f32[18,96], index: 4, kind: input, shape index: {}]   ;;  %s2799_s5 = inlined_call_operand.hbm [shape: f32[16,32], index: 5, kind: output, shape index: {}]  }
   0x1   :  { %1979 = vmatprep.subr.bf16.mxu1 %v2312_v0  ;;  %v2359_v1 = vld [vmem:[%s2796_s2 + $0x10] ss:$8 sps:$4 sm:$0xff]   ;;  %1983 = vmatprep.mubr.msk.bf16.mxu1 %vm2313_vm0, %v2312_v0  ;;  %v2366_v2 = vld [vmem:[%s2796_s2] ss:$8 sps:$4 sm:$0xff]  }
   0x2   :  { %v2371_v3 = vld [vmem:[%s2794_s0] sm:$0xff]  ;;  %1993 = vmatprep.subr.bf16.mxu0 %v2312_v0  ;;  %1995 = vmatprep.mubr.msk.bf16.mxu0 %vm2313_vm0, %v2312_v0  ;;  %v2380_v4 = vld [vmem:[%s2794_s0 + $0x8] sm:$0xff] }
   0x3   :  { %1980 = vmatpush3.bf16.msra.mxu1 %v2359_v1  ;;  %v62_v5 = vpack.c.bf16 %v2380_v4, %v2371_v3 }
   0x4   :  { %1981 = vmatprep.subr.bf16.mxu1 %v2312_v0 }
   0x7   :  { %1982 = vmatpush3.bf16.msra.mxu1 %v2366_v2 }
   0x8   :  { %1987 = vmatprep.subr.bf16.mxu1 %v2312_v0 }
   0xa   :  { %1984 = vmatmul.mubr.msk.bf16.vlgmr.msra.gmra.mxu1 %vm79_vm1, %v62_v5 }
   0xb   :  { %1989 = vmatprep.mubr.msk.bf16.mxu1 %vm2313_vm0, %v2312_v0 }
   0xc   :  { %10 = vsyncpa [#allocation3], 0  ;;  %v1845_v7 = vld [vmem:[%s2798_s4] ss:$0 sm:$0xff]  ;;  %s2314_s27 = smov 56   ;;  %s2315_s28 = smov 104  }
   0xd   :  { %s2316_s29 = smov 120   ;;  %s2317_s30 = smov 80   ;;  %vm31_vm2 = vcmask 64512   ;;  %v25_v16 = vld [vmem:[%s2795_s1 + $0x8] sm:$0xff]  ;;  %v1844_v17 = vld [vmem:[%s2795_s1 + $0x18] sm:$0xff]  ;;  %v24_v28 = vld [vmem:[%s2795_s1] sm:$0xff] }
   0xe   :  { %v30_v21 = vadd.f32 %v1844_v17, %v25_v16  ;;  %s2318_s10 = smov 8   ;;  %v1843_v29 = vld [vmem:[%s2795_s1 + $0x10] sm:$0xff]  ;;  %vm328_vm3 = vcmask 130048   ;;  %s2319_s1 = smov 112   ;;  %vm637_vm4 = vcmask 195584   ;;  %vm828_vm5 = vcmask 523264  }
   0xf   :  { %v29_v30 = vadd.f32 %v1843_v29, %v24_v28  ;;  %s2320_s15 = smov 32   ;;  %s2321_s16 = smov 16  }
  0x10   :  { %s2322_s17 = smov 24  }
  0x11   :  { %v2453_v31 = vsel %vm31_vm2, %v29_v30, -1e+30 }
  0xca   :  { %v117_v6 = vpop.f32.mrf.mxu1 }
  0xcb   :  { %v118_v10 = vadd.f32 %v1845_v7, %v117_v6 }
  0xcc   :  { %v1985_v8 = vpop.f32.mrf.mxu1 }
  0xce   :  { %v120_v9 = vpop.f32.mrf.mxu1 }
  0xcf   :  { %v121_v11 = vadd.f32 %v1845_v7, %v120_v9 }
  0xd0   :  { %v1986_v12 = vpop.f32.mrf.mxu1 }
  0xd1   :  { %v2393_v13 = vpack.c.bf16 %v121_v11, %v118_v10 }
  0xd3   :  { %130 = vrot.lane.b32.xlu1 %v2393_v13, %s2314_s27  ;;  %126 = vrot.lane.b32.xlu0 %v2393_v13, %s2315_s28 }
  0xd7   :  { %132 = vrot.lane.b32.xlu1 %v2393_v13, %s2316_s29  ;;  %128 = vrot.lane.b32.xlu0 %v2393_v13, %s2317_s30 }
 0x145   :  { %v2403_v14 = vpop.permute.xlu1 %130  ;;  %v2405_v15 = vpop.permute.xlu0 %126 }
 0x146   :  { %181 = vrot.lane.b32.xlu0 %v2405_v15, %s2316_s29 }
 0x149   :  { %v133_v18 = vpop.permute.xlu1 %132  ;;  %v2415_v19 = vpop.permute.xlu0 %128 }
 0x14a   :  { %v138_v20 = vsel %vm31_vm2, %v133_v18, 0  ;;  %279 = vrot.lane.b32.xlu0 %v2403_v14, %s2316_s29  ;;  %230 = vrot.lane.b32.xlu1 %v2415_v19, %s2316_s29 }
 0x14b   :  { %1988 = vmatpush3.bf16.xpose.msra.mxu1 %v138_v20 }
 0x14c   :  { %1999 = vmatprep.subr.bf16.mxu1 %v2312_v0 }
 0x14e   :  { %34 = vrot.lane.b32.xlu1 %v30_v21, %s2318_s10 }
 0x152   :  { %1990 = vmatmul.mubr.msk.bf16.vlgmr.msra.gmra.mxu1 %vm31_vm2, %v2393_v13 }
 0x153   :  { %2001 = vmatprep.mubr.msk.bf16.mxu1 %vm2313_vm0, %v2312_v0 }
 0x1b8   :  { %v182_v22 = vpop.permute.xlu0 %181 }
 0x1b9   :  { %v187_v23 = vsel %vm31_vm2, %v182_v22, 0 }
 0x1ba   :  { %1994 = vmatpush3.bf16.xpose.msra.mxu0 %v187_v23 }
 0x1bb   :  { %2005 = vmatprep.subr.bf16.mxu0 %v2312_v0 }
 0x1bc   :  { %v231_v24 = vpop.permute.xlu1 %230  ;;  %v280_v26 = vpop.permute.xlu0 %279 }
 0x1bd   :  { %v236_v25 = vsel %vm31_vm2, %v231_v24, 0  ;;  %v285_v27 = vsel %vm31_vm2, %v280_v26, 0 }
 0x1be   :  { %2000 = vmatpush3.bf16.xpose.msra.mxu1 %v236_v25 }
 0x1bf   :  { %2011 = vmatprep.subr.bf16.mxu1 %v2312_v0 }
 0x1c0   :  { %v35_v32 = vpop.permute.xlu1 %34 }
 0x1c1   :  { %1996 = vmatmul.mubr.msk.bf16.vlgmr.msra.gmra.mxu0 %vm31_vm2, %v2405_v15  ;;  %v2457_v36 = vsel %vm31_vm2, -1e+30, %v35_v32 }
 0x1c2   :  { %2006 = vmatpush3.bf16.xpose.msra.mxu0 %v285_v27  ;;  %2007 = vmatprep.mubr.msk.bf16.mxu0 %vm2313_vm0, %v2312_v0 }
 0x1c3   :  { %2017 = vmatprep.subr.bf16.mxu0 %v2312_v0 }
 0x1c5   :  { %2002 = vmatmul.mubr.msk.bf16.vlgmr.msra.gmra.mxu1 %vm31_vm2, %v2415_v19 }
 0x1c6   :  { %2013 = vmatprep.mubr.msk.bf16.mxu1 %vm2313_vm0, %v2312_v0 }
 0x1c9   :  { %2008 = vmatmul.mubr.msk.bf16.vlgmr.msra.gmra.mxu0 %vm31_vm2, %v2403_v14 }
 0x1ca   :  { %2019 = vmatprep.mubr.msk.bf16.mxu0 %vm2313_vm0, %v2312_v0 }
 0x212   :  { %v174_v33 = vpop.f32.mrf.mxu1 }
 0x213   :  { %v175_v34 = vadd.f32 %v174_v33, %v2453_v31 }
 0x214   :  { %v1991_v35 = vpop.f32.mrf.mxu1 }
 0x215   :  { %v329_v37 = vsel %vm328_vm3, %v175_v34, -inf }
 0x216   :  { %330 = vmax.xlane.f32.xlu0 %v329_v37  ;;  %v177_v38 = vpop.f32.mrf.mxu1 }
 0x217   :  { %v178_v39 = vadd.f32 %v177_v38, %v2457_v36 }
 0x218   :  { %v1992_v40 = vpop.f32.mrf.mxu1 }
 0x219   :  { %v332_v41 = vsel %vm328_vm3, %v178_v39, -inf }
 0x21a   :  { %333 = vmax.xlane.f32.xlu1 %v332_v41 }
 0x281   :  { %v223_v42 = vpop.f32.mrf.mxu0 }
 0x282   :  { %v224_v43 = vadd.f32 %v223_v42, %v2453_v31 }
 0x283   :  { %v1997_v44 = vpop.f32.mrf.mxu0 }
 0x284   :  { %v335_v45 = vsel %vm328_vm3, %v224_v43, -inf }
 0x285   :  { %v226_v46 = vpop.f32.mrf.mxu0  ;;  %336 = vmax.xlane.f32.xlu0 %v335_v45  ;;  %v272_v47 = vpop.f32.mrf.mxu1 }
 0x286   :  { %v227_v48 = vadd.f32 %v226_v46, %v2457_v36  ;;  %v273_v49 = vadd.f32 %v272_v47, %v2453_v31 }
 0x287   :  { %v1998_v50 = vpop.f32.mrf.mxu0  ;;  %v2003_v51 = vpop.f32.mrf.mxu1 }
 0x288   :  { %v338_v52 = vsel %vm328_vm3, %v227_v48, -inf  ;;  %v341_v53 = vsel %vm328_vm3, %v273_v49, -inf }
 0x289   :  { %v321_v54 = vpop.f32.mrf.mxu0  ;;  %339 = vmax.xlane.f32.xlu0 %v338_v52  ;;  %342 = vmax.xlane.f32.xlu1 %v341_v53  ;;  %v275_v55 = vpop.f32.mrf.mxu1 }
 0x28a   :  { %v322_v56 = vadd.f32 %v321_v54, %v2453_v31  ;;  %v276_v57 = vadd.f32 %v275_v55, %v2457_v36 }
 0x28b   :  { %v2004_v58 = vpop.f32.mrf.mxu1  ;;  %v2009_v59 = vpop.f32.mrf.mxu0 }
 0x28c   :  { %v347_v60 = vsel %vm328_vm3, %v322_v56, -inf  ;;  %v344_v61 = vsel %vm328_vm3, %v276_v57, -inf }
 0x28d   :  { %v324_v62 = vpop.f32.mrf.mxu0  ;;  %348 = vmax.xlane.f32.xlu1 %v347_v60  ;;  %345 = vmax.xlane.f32.xlu0 %v344_v61 }
 0x28e   :  { %v325_v63 = vadd.f32 %v324_v62, %v2457_v36 }
 0x28f   :  { %v2010_v5 = vpop.f32.mrf.mxu0 }
 0x290   :  { %v350_v6 = vsel %vm328_vm3, %v325_v63, -inf }
 0x291   :  { %351 = vmax.xlane.f32.xlu0 %v350_v6 }
 0x29e   :  { %421 = vrot.lane.b32.xlu1 %v2393_v13, %s2319_s1 }
 0x29f   :  { %v331_v9 = vpop.xlane.xlu0 %330 }
 0x2a0   :  { %v353_v11 = vsub.f32 %v175_v34, %v331_v9 }
 0x2a2   :  { %v361_v12 = vmul.f32 1.442695, %v353_v11 }
 0x2a3   :  { %v334_v7 = vpop.xlane.xlu1 %333 }
 0x2a4   :  { %v354_v8 = vsub.f32 %v178_v39, %v334_v7 }
 0x2a6   :  { %v363_v10 = vmul.f32 1.442695, %v354_v8 }
 0x2a8   :  { %2206 = vpow2.f32 %v363_v10 }
 0x2a9   :  { %2208 = vpow2.f32 %v361_v12 }
 0x2b5   :  { %v2207_v16 = vpop.eup %2206 }
 0x2b6   :  { %v380_v17 = vsel %vm328_vm3, %v2207_v16, 0.0  ;;  %v2209_v18 = vpop.eup %2208 }
 0x2b7   :  { %381 = vadd.xlane.f32.xlu0 %v380_v17  ;;  %v377_v20 = vsel %vm328_vm3, %v2209_v18, 0.0 }
 0x2c2   :  { %378 = vadd.xlane.f32.xlu1 %v377_v20 }
 0x30e   :  { %v337_v21 = vpop.xlane.xlu0 %336 }
 0x30f   :  { %v355_v22 = vsub.f32 %v224_v43, %v337_v21 }
 0x311   :  { %v365_v23 = vmul.f32 1.442695, %v355_v22 }
 0x312   :  { %v340_v13 = vpop.xlane.xlu0 %339  ;;  %v343_v24 = vpop.xlane.xlu1 %342 }
 0x313   :  { %2210 = vpow2.f32 %v365_v23  ;;  %v356_v25 = vsub.f32 %v227_v48, %v340_v13  ;;  %v357_v26 = vsub.f32 %v273_v49, %v343_v24 }
 0x315   :  { %v367_v27 = vmul.f32 1.442695, %v356_v25  ;;  %v369_v28 = vmul.f32 1.442695, %v357_v26 }
 0x316   :  { %v349_v29 = vpop.xlane.xlu1 %348  ;;  %v346_v30 = vpop.xlane.xlu0 %345 }
 0x317   :  { %2212 = vpow2.f32 %v367_v27  ;;  %v359_v32 = vsub.f32 %v322_v56, %v349_v29  ;;  %v358_v33 = vsub.f32 %v276_v57, %v346_v30 }
 0x318   :  { %2214 = vpow2.f32 %v369_v28 }
 0x319   :  { %v373_v34 = vmul.f32 1.442695, %v359_v32  ;;  %v371_v35 = vmul.f32 1.442695, %v358_v33 }
 0x31a   :  { %v422_v37 = vpop.permute.xlu1 %421  ;;  %v352_v38 = vpop.xlane.xlu0 %351 }
 0x31b   :  { %2216 = vpow2.f32 %v373_v34  ;;  %v360_v39 = vsub.f32 %v325_v63, %v352_v38  ;;  %2012 = vmatpush3.bf16.msra.mxu1 %v422_v37 }
 0x31c   :  { %2218 = vpow2.f32 %v371_v35  ;;  %2023 = vmatprep.subr.bf16.mxu1 %v2312_v0 }
 0x31d   :  { %v375_v40 = vmul.f32 1.442695, %v360_v39 }
 0x31f   :  { %2220 = vpow2.f32 %v375_v40 }
 0x320   :  { %v2211_v41 = vpop.eup %2210 }
 0x321   :  { %v383_v42 = vsel %vm328_vm3, %v2211_v41, 0.0 }
 0x322   :  { %384 = vadd.xlane.f32.xlu1 %v383_v42 }
 0x324   :  { %v2213_v43 = vpop.eup %2212 }
 0x325   :  { %v2215_v44 = vpop.eup %2214  ;;  %v386_v45 = vsel %vm328_vm3, %v2213_v43, 0.0 }
 0x326   :  { %v389_v46 = vsel %vm328_vm3, %v2215_v44, 0.0  ;;  %387 = vadd.xlane.f32.xlu0 %v386_v45 }
 0x327   :  { %390 = vadd.xlane.f32.xlu1 %v389_v46 }
 0x328   :  { %v2217_v47 = vpop.eup %2216 }
 0x329   :  { %v2219_v48 = vpop.eup %2218  ;;  %v395_v49 = vsel %vm328_vm3, %v2217_v47, 0.0 }
 0x32a   :  { %v392_v50 = vsel %vm328_vm3, %v2219_v48, 0.0 }
 0x32b   :  { %396 = vadd.xlane.f32.xlu1 %v395_v49  ;;  %393 = vadd.xlane.f32.xlu0 %v392_v50 }
 0x32c   :  { %v2221_v51 = vpop.eup %2220 }
 0x32d   :  { %v398_v52 = vsel %vm328_vm3, %v2221_v51, 0.0 }
 0x32f   :  { %399 = vadd.xlane.f32.xlu0 %v398_v52 }
 0x33c   :  { %515 = vrot.lane.b32.xlu1 %v2415_v19, %s2319_s1 }
 0x340   :  { %562 = vrot.lane.b32.xlu1 %v2403_v14, %s2319_s1  ;;  %v382_v53 = vpop.xlane.xlu0 %381 }
 0x341   :  { %2222 = vrcp.f32 %v382_v53 }
 0x345   :  { %468 = vrot.lane.b32.xlu0 %v2405_v15, %s2319_s1 }
 0x349   :  { %647 = vrot.lane.b32.xlu0 %v2359_v1, %s2320_s15 }
 0x34b   :  { %v379_v54 = vpop.xlane.xlu1 %378 }
 0x34c   :  { %2224 = vrcp.f32 %v379_v54 }
 0x34e   :  { %v2223_v55 = vpop.eup %2222 }
 0x34f   :  { %v410_v58 = vmul.f32 %v2223_v55, %v2207_v16 }
 0x359   :  { %v2225_v56 = vpop.eup %2224 }
 0x35a   :  { %v409_v57 = vmul.f32 %v2225_v56, %v2209_v18 }
 0x35c   :  { %v417_v59 = vpack.c.bf16 %v410_v58, %v409_v57 }
 0x35e   :  { %2014 = vmatmul.mubr.msk.bf16.vlgmr.msra.gmra.mxu1 %vm328_vm3, %v417_v59 }
 0x35f   :  { %2025 = vmatprep.mubr.msk.bf16.mxu1 %vm2313_vm0, %v2312_v0 }
 0x3ab   :  { %v385_v19 = vpop.xlane.xlu1 %384 }
 0x3ac   :  { %2226 = vrcp.f32 %v385_v19 }
 0x3af   :  { %v388_v14 = vpop.xlane.xlu0 %387 }
 0x3b0   :  { %v391_v60 = vpop.xlane.xlu1 %390  ;;  %2228 = vrcp.f32 %v388_v14 }
 0x3b1   :  { %2230 = vrcp.f32 %v391_v60  ;;  %v1857_v60 = vld [vmem:[%s2798_s4 + $0x1] ss:$0 sm:$0xff] }
 0x3b4   :  { %v397_v15 = vpop.xlane.xlu1 %396  ;;  %v394_v61 = vpop.xlane.xlu0 %393 }
 0x3b5   :  { %2232 = vrcp.f32 %v394_v61 }
 0x3b6   :  { %2234 = vrcp.f32 %v397_v15 }
 0x3b8   :  { %v516_v62 = vpop.permute.xlu1 %515  ;;  %v400_v63 = vpop.xlane.xlu0 %399 }
 0x3b9   :  { %2236 = vrcp.f32 %v400_v63  ;;  %2024 = vmatpush3.bf16.msra.mxu1 %v516_v62  ;;  %v2227_v5 = vpop.eup %2226 }
 0x3ba   :  { %2035 = vmatprep.subr.bf16.mxu1 %v2312_v0  ;;  %v411_v8 = vmul.f32 %v2227_v5, %v2211_v41 }
 0x3bc   :  { %v469_v6 = vpop.permute.xlu0 %468  ;;  %v563_v12 = vpop.permute.xlu1 %562 }
 0x3bd   :  { %v2229_v7 = vpop.eup %2228  ;;  %2018 = vmatpush3.bf16.msra.mxu0 %v469_v6 }
 0x3be   :  { %2029 = vmatprep.subr.bf16.mxu0 %v2312_v0  ;;  %v412_v9 = vmul.f32 %v2229_v7, %v2213_v43  ;;  %v2231_v11 = vpop.eup %2230 }
 0x3bf   :  { %v413_v18 = vmul.f32 %v2231_v11, %v2215_v44 }
 0x3c0   :  { %v418_v10 = vpack.c.bf16 %v412_v9, %v411_v8  ;;  %v648_v29 = vpop.permute.xlu0 %647 }
 0x3c2   :  { %2020 = vmatmul.mubr.msk.bf16.vlgmr.msra.gmra.mxu0 %vm328_vm3, %v418_v10  ;;  %v2233_v16 = vpop.eup %2232 }
 0x3c3   :  { %2030 = vmatpush3.bf16.msra.mxu0 %v563_v12  ;;  %2031 = vmatprep.mubr.msk.bf16.mxu0 %vm2313_vm0, %v2312_v0  ;;  %v2235_v17 = vpop.eup %2234  ;;  %v414_v20 = vmul.f32 %v2233_v16, %v2219_v48 }
 0x3c4   :  { %2043 = vmatprep.subr.bf16.mxu0 %v2312_v0  ;;  %v415_v23 = vmul.f32 %v2235_v17, %v2217_v47 }
 0x3c5   :  { %v419_v22 = vpack.c.bf16 %v414_v20, %v413_v18 }
 0x3c6   :  { %v2237_v21 = vpop.eup %2236 }
 0x3c7   :  { %v416_v13 = vmul.f32 %v2237_v21, %v2221_v51  ;;  %2026 = vmatmul.mubr.msk.bf16.vlgmr.msra.gmra.mxu1 %vm328_vm3, %v419_v22 }
 0x3c8   :  { %2039 = vmatprep.mubr.msk.bf16.mxu1 %vm2313_vm0, %v2312_v0  ;;  %2036 = vmatpush3.bf16.msra.mxu1 %v648_v29 }
 0x3c9   :  { %v420_v24 = vpack.c.bf16 %v416_v13, %v415_v23  ;;  %2037 = vmatprep.subr.bf16.mxu1 %v2312_v0  ;;  %v2193_v13 = vld [vmem:[%s2796_s2 + $0x4] ss:$8 sps:$4 sm:$0xff]  }
 0x3cb   :  { %2032 = vmatmul.mubr.msk.bf16.vlgmr.msra.gmra.mxu0 %vm328_vm3, %v420_v24  ;;  %v2194_v24 = vld [vmem:[%s2797_s3 + $0x18] sm:$0xff]  }
 0x3cc   :  { %2047 = vmatprep.mubr.msk.bf16.mxu0 %vm2313_vm0, %v2312_v0 }
 0x41e   :  { %v461_v25 = vpop.f32.mrf.mxu1 }
 0x420   :  { %v2015_v26 = vpop.f32.mrf.mxu1 }
 0x422   :  { %v464_v27 = vpop.f32.mrf.mxu1 }
 0x424   :  { %v2016_v28 = vpop.f32.mrf.mxu1 }
 0x482   :  { %v508_v30 = vpop.f32.mrf.mxu0 }
 0x484   :  { %v2021_v32 = vpop.f32.mrf.mxu0 }
 0x486   :  { %v511_v33 = vpop.f32.mrf.mxu0 }
 0x487   :  { %v2160_v34 = vpack.i.bf16 %v511_v33, %v508_v30  ;;  %v555_v35 = vpop.f32.mrf.mxu1 }
 0x488   :  { %v2022_v37 = vpop.f32.mrf.mxu0 }
 0x489   :  { %2161 = vrot.lane.b32.xlu1 %v2160_v34, %s2318_s10  ;;  %v2027_v38 = vpop.f32.mrf.mxu1  ;;  %v1859_v34 = vld [vmem:[%s2798_s4 + $0x4] ss:$0 sm:$0xff] }
 0x48b   :  { %v602_v39 = vpop.f32.mrf.mxu0  ;;  %v558_v40 = vpop.f32.mrf.mxu1 }
 0x48c   :  { %v2165_v1 = vpack.i.bf16 %v558_v40, %v555_v35 }
 0x48d   :  { %v2033_v41 = vpop.f32.mrf.mxu0  ;;  %v2028_v42 = vpop.f32.mrf.mxu1 }
 0x48e   :  { %2166 = vrot.lane.b32.xlu0 %v2165_v1, %s2321_s16 }
 0x48f   :  { %v605_v43 = vpop.f32.mrf.mxu0 }
 0x490   :  { %v2170_v44 = vpack.i.bf16 %v605_v43, %v602_v39  ;;  %v1860_v39 = vld [vmem:[%s2798_s4 + $0x5] ss:$0 sm:$0xff]  ;;  %v2195_v43 = vld [vmem:[%s2797_s3 + $0x10] sm:$0xff]  }
 0x491   :  { %v2034_v45 = vpop.f32.mrf.mxu0 }
 0x492   :  { %2171 = vrot.lane.b32.xlu1 %v2170_v44, %s2322_s17  ;;  %645 = vrot.lane.b32.xlu0 %v2366_v2, %s2320_s15  ;;  %v2196_v44 = vld [vmem:[%s2797_s3 + $0x8] sm:$0xff]   ;;  %v2197_v45 = vld [vmem:[%s2797_s3] sm:$0xff]  }
 0x4fb   :  { %v2162_v46 = vpop.permute.xlu1 %2161 }
 0x4fc   :  { %v2164_v47 = vunpack.i.h.bf16 %v2162_v46  ;;  %v2163_v48 = vunpack.i.l.bf16 %v2162_v46  ;;  %v1861_v46 = vld [vmem:[%s2798_s4 + $0x2] ss:$0 sm:$0xff] }
 0x4fe   :  { %v633_v53 = vsel %vm31_vm2, %v461_v25, %v2163_v48  ;;  %v634_v54 = vsel %vm31_vm2, %v464_v27, %v2164_v47 }
 0x500   :  { %v2167_v49 = vpop.permute.xlu0 %2166 }
 0x501   :  { %v2169_v50 = vunpack.i.h.bf16 %v2167_v49  ;;  %v2168_v51 = vunpack.i.l.bf16 %v2167_v49 }
 0x503   :  { %v636_v58 = vsel %vm328_vm3, %v634_v54, %v2169_v50  ;;  %v635_v59 = vsel %vm328_vm3, %v633_v53, %v2168_v51 }
 0x504   :  { %v2172_v52 = vpop.permute.xlu1 %2171  ;;  %v646_v57 = vpop.permute.xlu0 %645 }
 0x505   :  { %v2174_v55 = vunpack.i.h.bf16 %v2172_v52  ;;  %v2173_v56 = vunpack.i.l.bf16 %v2172_v52  ;;  %2038 = vmatpush3.bf16.msra.mxu1 %v646_v57 }
 0x506   :  { %2051 = vmatprep.subr.bf16.mxu1 %v2312_v0 }
 0x507   :  { %v638_v2 = vsel %vm637_vm4, %v635_v59, %v2173_v56  ;;  %v639_v19 = vsel %vm637_vm4, %v636_v58, %v2174_v55  ;;  %v1865_v56 = vld [vmem:[%s2798_s4 + $0x3] ss:$0 sm:$0xff] }
 0x508   :  { %v640_v14 = vpack.c.bf16 %v639_v19, %v638_v2 }
 0x50a   :  { %2040 = vmatmul.mubr.msk.bf16.vlgmr.msra.gmra.mxu1 %vm79_vm1, %v640_v14 }
 0x50b   :  { %2059 = vmatprep.mubr.msk.bf16.mxu1 %vm2313_vm0, %v2312_v0  ;;  %2052 = vmatpush3.bf16.msra.mxu1 %v2194_v24 }
 0x50c   :  { %2053 = vmatprep.subr.bf16.mxu1 %v2312_v0 }
 0x50f   :  { %2054 = vmatpush3.bf16.msra.mxu1 %v2195_v43 }
 0x510   :  { %2055 = vmatprep.subr.bf16.mxu1 %v2312_v0 }
 0x513   :  { %2056 = vmatpush3.bf16.msra.mxu1 %v2196_v44 }
 0x514   :  { %2057 = vmatprep.subr.bf16.mxu1 %v2312_v0 }
 0x517   :  { %2058 = vmatpush3.bf16.msra.mxu1 %v2197_v45 }
 0x518   :  { %2077 = vmatprep.subr.bf16.mxu1 %v2312_v0 }
 0x5ca   :  { %v688_v15 = vpop.f32.mrf.mxu1 }
 0x5cb   :  { %v689_v61 = vadd.f32 %v1857_v60, %v688_v15 }
 0x5cc   :  { %v2041_v62 = vpop.f32.mrf.mxu1 }
 0x5cd   :  { %v695_v63 = vadd.f32 %v689_v61, %v2371_v3 }
 0x5ce   :  { %v691_v5 = vpop.f32.mrf.mxu1 }
 0x5cf   :  { %v692_v6 = vadd.f32 %v1857_v60, %v691_v5  ;;  %v697_v7 = vsel %vm79_vm1, %v695_v63, 0.0 }
 0x5d0   :  { %698 = vadd.xlane.f32.xlu1 %v697_v7  ;;  %v2042_v8 = vpop.f32.mrf.mxu1 }
 0x5d1   :  { %v696_v9 = vadd.f32 %v692_v6, %v2380_v4  ;;  %v2192_v4 = vld [vmem:[%s2796_s2 + $0x14] ss:$8 sps:$4 sm:$0xff]  }
 0x5d2   :  { %2044 = vmatpush3.bf16.msra.mxu0 %v2192_v4 }
 0x5d3   :  { %v700_v10 = vsel %vm79_vm1, %v696_v9, 0.0  ;;  %2045 = vmatprep.subr.bf16.mxu0 %v2312_v0 }
 0x5d4   :  { %701 = vadd.xlane.f32.xlu0 %v700_v10 }
 0x5d6   :  { %2046 = vmatpush3.bf16.msra.mxu0 %v2193_v13 }
 0x5d7   :  { %2063 = vmatprep.subr.bf16.mxu0 %v2312_v0 }
 0x659   :  { %v699_v11 = vpop.xlane.xlu1 %698 }
 0x65a   :  { %v704_v12 = vmul.f32 0.03125, %v699_v11 }
 0x65c   :  { %v706_v16 = vsub.f32 %v695_v63, %v704_v12 }
 0x65d   :  { %v702_v17 = vpop.xlane.xlu0 %701 }
 0x65e   :  { %v705_v18 = vmul.f32 0.03125, %v702_v17  ;;  %v708_v20 = vmul.f32 %v706_v16, %v706_v16  ;;  %v2582_v17 = vld [vmem:[%s2796_s2 + $0x30] ss:$8 sps:$4 sm:$0xff]  }
 0x660   :  { %v707_v21 = vsub.f32 %v696_v9, %v705_v18  ;;  %v710_v3 = vsel %vm79_vm1, %v708_v20, 0.0  ;;  %v2588_v18 = vld [vmem:[%s2796_s2 + $0x20] ss:$8 sps:$4 sm:$0xff]  }
 0x661   :  { %711 = vadd.xlane.f32.xlu0 %v710_v3 }
 0x662   :  { %v709_v22 = vmul.f32 %v707_v21, %v707_v21 }
 0x664   :  { %v713_v23 = vsel %vm79_vm1, %v709_v22, 0.0 }
 0x665   :  { %714 = vadd.xlane.f32.xlu1 %v713_v23 }
 0x6ea   :  { %v712_v25 = vpop.xlane.xlu0 %711 }
 0x6eb   :  { %v716_v26 = vmul.f32 0.03125, %v712_v25  ;;  %v1871_v25 = vld [vmem:[%s2798_s4 + $0x6] ss:$0 sm:$0xff] }
 0x6ed   :  { %v718_v27 = vadd.f32 1e-05, %v716_v26 }
 0x6ee   :  { %v715_v28 = vpop.xlane.xlu1 %714 }
 0x6ef   :  { %2238 = vrsqrt.f32 %v718_v27  ;;  %v717_v29 = vmul.f32 0.03125, %v715_v28 }
 0x6f1   :  { %v719_v30 = vadd.f32 1e-05, %v717_v29  ;;  %v1872_v29 = vld [vmem:[%s2798_s4 + $0x7] ss:$0 sm:$0xff] }
 0x6f3   :  { %2240 = vrsqrt.f32 %v719_v30 }
 0x6fc   :  { %v2239_v32 = vpop.eup %2238 }
 0x6fd   :  { %v722_v33 = vmul.f32 %v2239_v32, %v706_v16 }
 0x6ff   :  { %v728_v38 = vmul.f32 %v1859_v34, %v722_v33 }
 0x700   :  { %v2241_v35 = vpop.eup %2240 }
 0x701   :  { %v723_v37 = vmul.f32 %v2241_v35, %v707_v21  ;;  %v734_v1 = vadd.f32 %v1860_v39, %v728_v38 }
 0x703   :  { %v729_v40 = vmul.f32 %v1859_v34, %v723_v37  ;;  %v1889_v37 = vld [vmem:[%s2798_s4 + $0x8] ss:$0 sm:$0xff] }
 0x705   :  { %v735_v41 = vadd.f32 %v1860_v39, %v729_v40 }
 0x707   :  { %v736_v42 = vpack.c.bf16 %v735_v41, %v734_v1 }
 0x709   :  { %2048 = vmatmul.mubr.msk.bf16.vlgmr.msra.gmra.mxu0 %vm79_vm1, %v736_v42 }
 0x70a   :  { %2067 = vmatprep.mubr.msk.bf16.mxu0 %vm2313_vm0, %v2312_v0  ;;  %2064 = vmatpush3.bf16.msra.mxu0 %v2582_v17 }
 0x70b   :  { %2065 = vmatprep.subr.bf16.mxu0 %v2312_v0 }
 0x70e   :  { %2066 = vmatpush3.bf16.msra.mxu0 %v2588_v18 }
 0x70f   :  { %2071 = vmatprep.subr.bf16.mxu0 %v2312_v0 }
 0x7c9   :  { %v790_v47 = vpop.f32.mrf.mxu0 }
 0x7ca   :  { %v791_v49 = vadd.f32 %v1861_v46, %v790_v47 }
 0x7cb   :  { %v2049_v48 = vpop.f32.mrf.mxu0 }
 0x7cc   :  { %v797_v53 = vmax.f32 %v791_v49, 0.0 }
 0x7cd   :  { %v793_v50 = vpop.f32.mrf.mxu0 }
 0x7ce   :  { %v794_v51 = vadd.f32 %v1861_v46, %v793_v50 }
 0x7cf   :  { %v2050_v52 = vpop.f32.mrf.mxu0 }
 0x7d0   :  { %v798_v54 = vmax.f32 %v794_v51, 0.0 }
 0x7d2   :  { %v799_v55 = vpack.c.bf16 %v798_v54, %v797_v53 }
 0x7d4   :  { %2060 = vmatmul.mubr.msk.bf16.vlgmr.msra.gmra.mxu1 %vm828_vm5, %v799_v55 }
 0x7d5   :  { %2079 = vmatprep.mubr.msk.bf16.mxu1 %vm2313_vm0, %v2312_v0 }
 0x894   :  { %v866_v57 = vpop.f32.mrf.mxu1 }
 0x895   :  { %v867_v58 = vadd.f32 %v1865_v56, %v866_v57 }
 0x896   :  { %v2061_v59 = vpop.f32.mrf.mxu1 }
 0x897   :  { %v873_v2 = vadd.f32 %v867_v58, %v734_v1 }
 0x898   :  { %v869_v19 = vpop.f32.mrf.mxu1 }
 0x899   :  { %v870_v14 = vadd.f32 %v1865_v56, %v869_v19  ;;  %v875_v60 = vsel %vm79_vm1, %v873_v2, 0.0 }
 0x89a   :  { %876 = vadd.xlane.f32.xlu0 %v875_v60  ;;  %v2062_v15 = vpop.f32.mrf.mxu1 }
 0x89b   :  { %v874_v61 = vadd.f32 %v870_v14, %v735_v41 }
 0x89d   :  { %v878_v62 = vsel %vm79_vm1, %v874_v61, 0.0 }
 0x89e   :  { %879 = vadd.xlane.f32.xlu1 %v878_v62 }
 0x923   :  { %v877_v63 = vpop.xlane.xlu0 %876 }
 0x924   :  { %v881_v5 = vmul.f32 0.03125, %v877_v63 }
 0x926   :  { %v883_v6 = vsub.f32 %v873_v2, %v881_v5 }
 0x927   :  { %v880_v7 = vpop.xlane.xlu1 %879 }
 0x928   :  { %v882_v8 = vmul.f32 0.03125, %v880_v7  ;;  %v885_v9 = vmul.f32 %v883_v6, %v883_v6 }
 0x92a   :  { %v884_v10 = vsub.f32 %v874_v61, %v882_v8  ;;  %v887_v11 = vsel %vm79_vm1, %v885_v9, 0.0 }
 0x92b   :  { %888 = vadd.xlane.f32.xlu0 %v887_v11 }
 0x92c   :  { %v886_v12 = vmul.f32 %v884_v10, %v884_v10 }
 0x92e   :  { %v890_v16 = vsel %vm79_vm1, %v886_v12, 0.0 }
 0x92f   :  { %891 = vadd.xlane.f32.xlu1 %v890_v16 }
 0x9b4   :  { %v889_v20 = vpop.xlane.xlu0 %888 }
 0x9b5   :  { %v893_v21 = vmul.f32 0.03125, %v889_v20 }
 0x9b7   :  { %v895_v3 = vadd.f32 1e-05, %v893_v21 }
 0x9b8   :  { %v892_v22 = vpop.xlane.xlu1 %891 }
 0x9b9   :  { %2242 = vrsqrt.f32 %v895_v3  ;;  %v894_v23 = vmul.f32 0.03125, %v892_v22 }
 0x9bb   :  { %v896_v4 = vadd.f32 1e-05, %v894_v23 }
 0x9bd   :  { %2244 = vrsqrt.f32 %v896_v4 }
 0x9c6   :  { %v2243_v13 = vpop.eup %2242 }
 0x9c7   :  { %v899_v24 = vmul.f32 %v2243_v13, %v883_v6 }
 0x9c9   :  { %v905_v28 = vmul.f32 %v1871_v25, %v899_v24 }
 0x9ca   :  { %v2245_v26 = vpop.eup %2244 }
 0x9cb   :  { %v900_v27 = vmul.f32 %v2245_v26, %v884_v10  ;;  %v2599_v32 = vadd.f32 %v1872_v29, %v905_v28 }
 0x9cd   :  { %v906_v30 = vmul.f32 %v1871_v25, %v900_v27 }
 0x9cf   :  { %v2601_v33 = vadd.f32 %v1872_v29, %v906_v30 }
 0x9d1   :  { %v939_v34 = vpack.c.bf16 %v2601_v33, %v2599_v32 }
 0x9d3   :  { %2068 = vmatmul.mubr.msk.bf16.vlgmr.msra.gmra.mxu0 %vm79_vm1, %v939_v34 }
 0x9d4   :  { %2073 = vmatprep.mubr.msk.bf16.mxu0 %vm2313_vm0, %v2312_v0 }
 0xa93   :  { %v993_v35 = vpop.f32.mrf.mxu0 }
 0xa94   :  { %v994_v40 = vadd.f32 %v1889_v37, %v993_v35 }
 0xa95   :  { %v2069_v38 = vpop.f32.mrf.mxu0 }
 0xa97   :  { %v996_v39 = vpop.f32.mrf.mxu0 }
 0xa98   :  { %v997_v1 = vadd.f32 %v1889_v37, %v996_v39 }
 0xa99   :  { %v2070_v41 = vpop.f32.mrf.mxu0 }
 0xa9a   :  { %v2611_v42 = vpack.c.bf16 %v997_v1, %v994_v40 }
 0xa9c   :  { %1004 = vrot.lane.b32.xlu1 %v2611_v42, %s2317_s30  ;;  %1002 = vrot.lane.b32.xlu0 %v2611_v42, %s2315_s28 }
 0xaa0   :  { %1006 = vrot.lane.b32.xlu1 %v2611_v42, %s2314_s27  ;;  %1008 = vrot.lane.b32.xlu0 %v2611_v42, %s2316_s29 }
 0xb0e   :  { %v2621_v43 = vpop.permute.xlu1 %1004  ;;  %v2623_v44 = vpop.permute.xlu0 %1002 }
 0xb0f   :  { %1106 = vrot.lane.b32.xlu0 %v2621_v43, %s2316_s29  ;;  %1057 = vrot.lane.b32.xlu1 %v2623_v44, %s2316_s29 }
 0xb12   :  { %v2629_v45 = vpop.permute.xlu1 %1006  ;;  %v1009_v46 = vpop.permute.xlu0 %1008 }
 0xb13   :  { %v1014_v47 = vsel %vm31_vm2, %v1009_v46, 0  ;;  %1155 = vrot.lane.b32.xlu1 %v2629_v45, %s2316_s29  ;;  %s2323_s29 = smov [#allocation2]  }
 0xb14   :  { %2072 = vmatpush3.bf16.xpose.msra.mxu0 %v1014_v47  ;;  %s1832_s30 = sshll.u32 %s2323_s29, 4  ;;  %s1833_s30 = int_to_ptr.vmem [resolvable:$true] %s1832_s30 }
 0xb15   :  { %2083 = vmatprep.subr.bf16.mxu0 %v2312_v0  ;;  %p2295_p1 = scmp.lt.s32.totalorder %s1833_s30, %s1833_s30 }
 0xb1b   :  { %2074 = vmatmul.mubr.msk.bf16.vlgmr.msra.gmra.mxu0 %vm31_vm2, %v2611_v42 }
 0xb1c   :  { %2085 = vmatprep.mubr.msk.bf16.mxu0 %vm2313_vm0, %v2312_v0 }
 0xb81   :  { %v1058_v48 = vpop.permute.xlu1 %1057  ;;  %v1107_v49 = vpop.permute.xlu0 %1106 }
 0xb82   :  { %v1063_v50 = vsel %vm31_vm2, %v1058_v48, 0  ;;  %v1112_v51 = vsel %vm31_vm2, %v1107_v49, 0 }
 0xb83   :  { %2078 = vmatpush3.bf16.xpose.msra.mxu1 %v1063_v50  ;;  %2084 = vmatpush3.bf16.xpose.msra.mxu0 %v1112_v51 }
 0xb84   :  { %2089 = vmatprep.subr.bf16.mxu1 %v2312_v0  ;;  %2095 = vmatprep.subr.bf16.mxu0 %v2312_v0 }
 0xb85   :  { %v1156_v52 = vpop.permute.xlu1 %1155 }
 0xb86   :  { %v1161_v53 = vsel %vm31_vm2, %v1156_v52, 0 }
 0xb8a   :  { %2080 = vmatmul.mubr.msk.bf16.vlgmr.msra.gmra.mxu1 %vm31_vm2, %v2623_v44  ;;  %2086 = vmatmul.mubr.msk.bf16.vlgmr.msra.gmra.mxu0 %vm31_vm2, %v2621_v43 }
 0xb8b   :  { %2090 = vmatpush3.bf16.xpose.msra.mxu1 %v1161_v53  ;;  %2091 = vmatprep.mubr.msk.bf16.mxu1 %vm2313_vm0, %v2312_v0 }
 0xb8c   :  { %2097 = vmatprep.mubr.msk.bf16.mxu0 %vm2313_vm0, %v2312_v0  ;;  %2101 = vmatprep.subr.bf16.mxu1 %v2312_v0 }
 0xb92   :  { %2092 = vmatmul.mubr.msk.bf16.vlgmr.msra.gmra.mxu1 %vm31_vm2, %v2629_v45 }
 0xb93   :  { %2103 = vmatprep.mubr.msk.bf16.mxu1 %vm2313_vm0, %v2312_v0 }
 0xbdb   :  { %v1050_v54 = vpop.f32.mrf.mxu0 }
 0xbdc   :  { %v1051_v55 = vadd.f32 %v1050_v54, %v2453_v31 }
 0xbdd   :  { %v2075_v56 = vpop.f32.mrf.mxu0 }
 0xbde   :  { %v1204_v57 = vsel %vm328_vm3, %v1051_v55, -inf }
 0xbdf   :  { %1205 = vmax.xlane.f32.xlu0 %v1204_v57  ;;  %v1053_v58 = vpop.f32.mrf.mxu0 }
 0xbe0   :  { %v1054_v59 = vadd.f32 %v1053_v58, %v2457_v36 }
 0xbe1   :  { %v2076_v2 = vpop.f32.mrf.mxu0 }
 0xbe2   :  { %v1207_v19 = vsel %vm328_vm3, %v1054_v59, -inf }
 0xbe3   :  { %1208 = vmax.xlane.f32.xlu1 %v1207_v19 }
 0xc4a   :  { %v1099_v14 = vpop.f32.mrf.mxu1  ;;  %v1148_v60 = vpop.f32.mrf.mxu0 }
 0xc4b   :  { %v1100_v15 = vadd.f32 %v1099_v14, %v2453_v31  ;;  %v1149_v61 = vadd.f32 %v1148_v60, %v2453_v31 }
 0xc4c   :  { %v2081_v62 = vpop.f32.mrf.mxu1  ;;  %v2087_v63 = vpop.f32.mrf.mxu0 }
 0xc4d   :  { %v1216_v5 = vsel %vm328_vm3, %v1149_v61, -inf  ;;  %v1210_v6 = vsel %vm328_vm3, %v1100_v15, -inf }
 0xc4e   :  { %1217 = vmax.xlane.f32.xlu1 %v1216_v5  ;;  %v1151_v7 = vpop.f32.mrf.mxu0  ;;  %1211 = vmax.xlane.f32.xlu0 %v1210_v6  ;;  %v1102_v8 = vpop.f32.mrf.mxu1 }
 0xc4f   :  { %v1103_v9 = vadd.f32 %v1102_v8, %v2457_v36  ;;  %v1152_v12 = vadd.f32 %v1151_v7, %v2457_v36 }
 0xc50   :  { %v2082_v10 = vpop.f32.mrf.mxu1  ;;  %v2088_v11 = vpop.f32.mrf.mxu0 }
 0xc51   :  { %v1213_v16 = vsel %vm328_vm3, %v1103_v9, -inf  ;;  %v1219_v22 = vsel %vm328_vm3, %v1152_v12, -inf }
 0xc52   :  { %1214 = vmax.xlane.f32.xlu0 %v1213_v16  ;;  %v1197_v20 = vpop.f32.mrf.mxu1 }
 0xc53   :  { %v1198_v21 = vadd.f32 %v1197_v20, %v2453_v31 }
 0xc54   :  { %v2093_v3 = vpop.f32.mrf.mxu1 }
 0xc55   :  { %v1222_v23 = vsel %vm328_vm3, %v1198_v21, -inf }
 0xc56   :  { %1220 = vmax.xlane.f32.xlu0 %v1219_v22  ;;  %1223 = vmax.xlane.f32.xlu1 %v1222_v23  ;;  %v1200_v4 = vpop.f32.mrf.mxu1 }
 0xc57   :  { %v1201_v13 = vadd.f32 %v1200_v4, %v2457_v36 }
 0xc58   :  { %v2094_v24 = vpop.f32.mrf.mxu1 }
 0xc59   :  { %v1225_v25 = vsel %vm328_vm3, %v1201_v13, -inf }
 0xc5a   :  { %1226 = vmax.xlane.f32.xlu0 %v1225_v25 }
 0xc67   :  { %1296 = vrot.lane.b32.xlu1 %v2611_v42, %s2319_s1 }
 0xc68   :  { %v1206_v31 = vpop.xlane.xlu0 %1205 }
 0xc69   :  { %v1228_v29 = vsub.f32 %v1051_v55, %v1206_v31 }
 0xc6b   :  { %v1236_v30 = vmul.f32 1.442695, %v1228_v29 }
 0xc6c   :  { %v1209_v26 = vpop.xlane.xlu1 %1208 }
 0xc6d   :  { %v1229_v27 = vsub.f32 %v1054_v59, %v1209_v26 }
 0xc6f   :  { %v1238_v28 = vmul.f32 1.442695, %v1229_v27 }
 0xc71   :  { %2246 = vpow2.f32 %v1238_v28 }
 0xc72   :  { %2248 = vpow2.f32 %v1236_v30 }
 0xc7e   :  { %v2247_v34 = vpop.eup %2246 }
 0xc7f   :  { %v1255_v35 = vsel %vm328_vm3, %v2247_v34, 0.0  ;;  %v2249_v36 = vpop.eup %2248 }
 0xc80   :  { %1256 = vadd.xlane.f32.xlu0 %v1255_v35  ;;  %v1252_v37 = vsel %vm328_vm3, %v2249_v36, 0.0 }
 0xc8b   :  { %1253 = vadd.xlane.f32.xlu1 %v1252_v37 }
 0xcd7   :  { %v1218_v38 = vpop.xlane.xlu1 %1217  ;;  %v1212_v39 = vpop.xlane.xlu0 %1211 }
 0xcd8   :  { %v1232_v40 = vsub.f32 %v1149_v61, %v1218_v38  ;;  %v1230_v1 = vsub.f32 %v1100_v15, %v1212_v39 }
 0xcda   :  { %v1240_v41 = vmul.f32 1.442695, %v1230_v1  ;;  %v1244_v42 = vmul.f32 1.442695, %v1232_v40 }
 0xcdb   :  { %v1215_v46 = vpop.xlane.xlu0 %1214 }
 0xcdc   :  { %v1231_v47 = vsub.f32 %v1103_v9, %v1215_v46  ;;  %2250 = vpow2.f32 %v1240_v41 }
 0xcdd   :  { %2252 = vpow2.f32 %v1244_v42 }
 0xcde   :  { %v1242_v48 = vmul.f32 1.442695, %v1231_v47 }
 0xcdf   :  { %v1221_v49 = vpop.xlane.xlu0 %1220  ;;  %v1224_v50 = vpop.xlane.xlu1 %1223 }
 0xce0   :  { %2254 = vpow2.f32 %v1242_v48  ;;  %v1233_v51 = vsub.f32 %v1152_v12, %v1221_v49  ;;  %v1234_v52 = vsub.f32 %v1198_v21, %v1224_v50 }
 0xce2   :  { %v1246_v53 = vmul.f32 1.442695, %v1233_v51  ;;  %v1248_v54 = vmul.f32 1.442695, %v1234_v52 }
 0xce3   :  { %v1297_v55 = vpop.permute.xlu1 %1296  ;;  %v1227_v56 = vpop.xlane.xlu0 %1226 }
 0xce4   :  { %2256 = vpow2.f32 %v1246_v53  ;;  %v1235_v57 = vsub.f32 %v1201_v13, %v1227_v56  ;;  %2096 = vmatpush3.bf16.msra.mxu0 %v1297_v55 }
 0xce5   :  { %2258 = vpow2.f32 %v1248_v54  ;;  %2107 = vmatprep.subr.bf16.mxu0 %v2312_v0 }
 0xce6   :  { %v1250_v58 = vmul.f32 1.442695, %v1235_v57 }
 0xce8   :  { %2260 = vpow2.f32 %v1250_v58 }
 0xce9   :  { %v2251_v59 = vpop.eup %2250 }
 0xcea   :  { %v1258_v2 = vsel %vm328_vm3, %v2251_v59, 0.0  ;;  %v2253_v19 = vpop.eup %2252 }
 0xceb   :  { %1259 = vadd.xlane.f32.xlu1 %v1258_v2  ;;  %v1264_v15 = vsel %vm328_vm3, %v2253_v19, 0.0 }
 0xced   :  { %v2255_v14 = vpop.eup %2254 }
 0xcee   :  { %v1261_v60 = vsel %vm328_vm3, %v2255_v14, 0.0 }
 0xcef   :  { %1262 = vadd.xlane.f32.xlu0 %v1261_v60  ;;  %1265 = vadd.xlane.f32.xlu1 %v1264_v15 }
 0xcf1   :  { %v2257_v61 = vpop.eup %2256 }
 0xcf2   :  { %v2259_v62 = vpop.eup %2258  ;;  %v1267_v63 = vsel %vm328_vm3, %v2257_v61, 0.0 }
 0xcf3   :  { %v1270_v5 = vsel %vm328_vm3, %v2259_v62, 0.0  ;;  %1268 = vadd.xlane.f32.xlu0 %v1267_v63 }
 0xcf4   :  { %1271 = vadd.xlane.f32.xlu1 %v1270_v5 }
 0xcf5   :  { %v2261_v6 = vpop.eup %2260 }
 0xcf6   :  { %v1273_v7 = vsel %vm328_vm3, %v2261_v6, 0.0 }
 0xcf7   :  { %1274 = vadd.xlane.f32.xlu0 %v1273_v7 }
 0xd05   :  { %1390 = vrot.lane.b32.xlu1 %v2621_v43, %s2319_s1 }
 0xd09   :  { %1437 = vrot.lane.b32.xlu1 %v2629_v45, %s2319_s1  ;;  %v1257_v8 = vpop.xlane.xlu0 %1256 }
 0xd0a   :  { %2262 = vrcp.f32 %v1257_v8 }
 0xd0d   :  { %1343 = vrot.lane.b32.xlu0 %v2623_v44, %s2319_s1  ;;  %s2290_s1 = scalar_lea.vmem %s1833_s30, 256 }
 0xd0e   :  { %p2291_p0 = scmp.ne.s32.totalorder %s1833_s30, %s2290_s1  ;;  %p2296_p2 = scmp.lt.s32.totalorder %s2290_s1, %s2290_s1 }
 0xd10   :  { %p2297_p3 = por %p2296_p2, %p2295_p1 }
 0xd11   :  { %1521 = vrot.lane.b32.xlu0 %v2582_v17, %s2320_s15 }
 0xd12   :  { %p2298_p4 = pnand %p2297_p3, %p2291_p0 }
 0xd14   :  { %v1254_v9 = vpop.xlane.xlu1 %1253 }
 0xd15   :  { %2264 = vrcp.f32 %v1254_v9 }
 0xd17   :  { %v2263_v10 = vpop.eup %2262 }
 0xd18   :  { %v1285_v16 = vmul.f32 %v2263_v10, %v2247_v34 }
 0xd22   :  { %v2265_v11 = vpop.eup %2264 }
 0xd23   :  { %v1284_v12 = vmul.f32 %v2265_v11, %v2249_v36 }
 0xd25   :  { %v1292_v20 = vpack.c.bf16 %v1285_v16, %v1284_v12 }
 0xd27   :  { %2098 = vmatmul.mubr.msk.bf16.vlgmr.msra.gmra.mxu0 %vm328_vm3, %v1292_v20 }
 0xd28   :  { %2109 = vmatprep.mubr.msk.bf16.mxu0 %vm2313_vm0, %v2312_v0 }
 0xd74   :  { %v1260_v43 = vpop.xlane.xlu1 %1259 }
 0xd75   :  { %2266 = vrcp.f32 %v1260_v43  ;;  %v1901_v43 = vld [vmem:[%s2798_s4 + $0x9] ss:$0 sm:$0xff] }
 0xd78   :  { %v1263_v44 = vpop.xlane.xlu0 %1262  ;;  %v1266_v45 = vpop.xlane.xlu1 %1265 }
 0xd79   :  { %2268 = vrcp.f32 %v1263_v44 }
 0xd7a   :  { %2270 = vrcp.f32 %v1266_v45 }
 0xd7c   :  { %v1269_v17 = vpop.xlane.xlu0 %1268 }
 0xd7d   :  { %v1272_v21 = vpop.xlane.xlu1 %1271  ;;  %2272 = vrcp.f32 %v1269_v17 }
 0xd7e   :  { %2274 = vrcp.f32 %v1272_v21 }
 0xd80   :  { %v1275_v3 = vpop.xlane.xlu0 %1274 }
 0xd81   :  { %v1391_v22 = vpop.permute.xlu1 %1390  ;;  %2276 = vrcp.f32 %v1275_v3 }
 0xd82   :  { %2108 = vmatpush3.bf16.msra.mxu0 %v1391_v22  ;;  %v2267_v23 = vpop.eup %2266 }
 0xd83   :  { %2119 = vmatprep.subr.bf16.mxu0 %v2312_v0  ;;  %v1286_v24 = vmul.f32 %v2267_v23, %v2251_v59 }
 0xd84   :  { %v1344_v4 = vpop.permute.xlu0 %1343 }
 0xd85   :  { %2102 = vmatpush3.bf16.msra.mxu1 %v1344_v4  ;;  %v1438_v28 = vpop.permute.xlu1 %1437 }
 0xd86   :  { %v2269_v13 = vpop.eup %2268  ;;  %2113 = vmatprep.subr.bf16.mxu1 %v2312_v0 }
 0xd87   :  { %v1287_v25 = vmul.f32 %v2269_v13, %v2255_v14  ;;  %v2271_v26 = vpop.eup %2270 }
 0xd88   :  { %v1288_v29 = vmul.f32 %v2271_v26, %v2253_v19  ;;  %v1522_v40 = vpop.permute.xlu0 %1521 }
 0xd89   :  { %v1293_v27 = vpack.c.bf16 %v1287_v25, %v1286_v24 }
 0xd8a   :  { %v2273_v31 = vpop.eup %2272 }
 0xd8b   :  { %2104 = vmatmul.mubr.msk.bf16.vlgmr.msra.gmra.mxu1 %vm328_vm3, %v1293_v27  ;;  %v1289_v30 = vmul.f32 %v2273_v31, %v2257_v61  ;;  %v2275_v34 = vpop.eup %2274 }
 0xd8c   :  { %2114 = vmatpush3.bf16.msra.mxu1 %v1438_v28  ;;  %2115 = vmatprep.mubr.msk.bf16.mxu1 %vm2313_vm0, %v2312_v0  ;;  %v1290_v37 = vmul.f32 %v2275_v34, %v2259_v62 }
 0xd8d   :  { %v1294_v35 = vpack.c.bf16 %v1289_v30, %v1288_v29  ;;  %2127 = vmatprep.subr.bf16.mxu1 %v2312_v0 }
 0xd8e   :  { %v2277_v36 = vpop.eup %2276 }
 0xd8f   :  { %2110 = vmatmul.mubr.msk.bf16.vlgmr.msra.gmra.mxu0 %vm328_vm3, %v1294_v35  ;;  %v1291_v38 = vmul.f32 %v2277_v36, %v2261_v6  ;;  %v2201_v36 = vld [vmem:[%s2796_s2 + $0x24] ss:$8 sps:$4 sm:$0xff]  }
 0xd90   :  { %2123 = vmatprep.mubr.msk.bf16.mxu0 %vm2313_vm0, %v2312_v0  ;;  %2120 = vmatpush3.bf16.msra.mxu0 %v1522_v40 }
 0xd91   :  { %v1295_v39 = vpack.c.bf16 %v1291_v38, %v1290_v37  ;;  %2121 = vmatprep.subr.bf16.mxu0 %v2312_v0  ;;  %v2202_v37 = vld [vmem:[%s2797_s3 + $0x38] sm:$0xff]  }
 0xd93   :  { %2116 = vmatmul.mubr.msk.bf16.vlgmr.msra.gmra.mxu1 %vm328_vm3, %v1295_v39 }
 0xd94   :  { %2131 = vmatprep.mubr.msk.bf16.mxu1 %vm2313_vm0, %v2312_v0 }
 0xde7   :  { %v1336_v1 = vpop.f32.mrf.mxu0 }
 0xde9   :  { %v2099_v41 = vpop.f32.mrf.mxu0 }
 0xdeb   :  { %v1339_v42 = vpop.f32.mrf.mxu0 }
 0xded   :  { %v2100_v46 = vpop.f32.mrf.mxu0 }
 0xe4b   :  { %v1383_v47 = vpop.f32.mrf.mxu1 }
 0xe4d   :  { %v2105_v48 = vpop.f32.mrf.mxu1 }
 0xe4e   :  { %v1903_v48 = vld [vmem:[%s2798_s4 + $0xc] ss:$0 sm:$0xff] }
 0xe4f   :  { %v1386_v49 = vpop.f32.mrf.mxu1  ;;  %v1430_v50 = vpop.f32.mrf.mxu0 }
 0xe50   :  { %v2175_v51 = vpack.i.bf16 %v1386_v49, %v1383_v47 }
 0xe51   :  { %v2106_v52 = vpop.f32.mrf.mxu1  ;;  %v2111_v53 = vpop.f32.mrf.mxu0 }
 0xe52   :  { %2176 = vrot.lane.b32.xlu1 %v2175_v51, %s2318_s10  ;;  %v1904_v52 = vld [vmem:[%s2798_s4 + $0xd] ss:$0 sm:$0xff] }
 0xe53   :  { %v1433_v54 = vpop.f32.mrf.mxu0  ;;  %v1477_v55 = vpop.f32.mrf.mxu1 }
 0xe54   :  { %v2180_v56 = vpack.i.bf16 %v1433_v54, %v1430_v50 }
 0xe55   :  { %v2112_v57 = vpop.f32.mrf.mxu0  ;;  %v2117_v58 = vpop.f32.mrf.mxu1 }
 0xe56   :  { %2181 = vrot.lane.b32.xlu0 %v2180_v56, %s2321_s16  ;;  %v2203_v57 = vld [vmem:[%s2797_s3 + $0x30] sm:$0xff]   ;;  %v2204_v58 = vld [vmem:[%s2797_s3 + $0x28] sm:$0xff]  }
 0xe57   :  { %v1480_v59 = vpop.f32.mrf.mxu1 }
 0xe58   :  { %v2185_v2 = vpack.i.bf16 %v1480_v59, %v1477_v55  ;;  %v2205_v59 = vld [vmem:[%s2797_s3 + $0x20] sm:$0xff]  }
 0xe59   :  { %v2118_v19 = vpop.f32.mrf.mxu1 }
 0xe5a   :  { %2186 = vrot.lane.b32.xlu1 %v2185_v2, %s2322_s17  ;;  %1519 = vrot.lane.b32.xlu0 %v2588_v18, %s2320_s15  ;;  %v1905_v2 = vld [vmem:[%s2798_s4 + $0xa] ss:$0 sm:$0xff] }
 0xec4   :  { %v2177_v14 = vpop.permute.xlu1 %2176 }
 0xec5   :  { %v2179_v15 = vunpack.i.h.bf16 %v2177_v14  ;;  %v2178_v61 = vunpack.i.l.bf16 %v2177_v14 }
 0xec7   :  { %v1509_v7 = vsel %vm31_vm2, %v1339_v42, %v2179_v15  ;;  %v1508_v8 = vsel %vm31_vm2, %v1336_v1, %v2178_v61 }
 0xec8   :  { %v2182_v60 = vpop.permute.xlu0 %2181 }
 0xec9   :  { %v2184_v62 = vunpack.i.h.bf16 %v2182_v60  ;;  %v2183_v63 = vunpack.i.l.bf16 %v2182_v60 }
 0xecb   :  { %v1510_v11 = vsel %vm328_vm3, %v1508_v8, %v2183_v63  ;;  %v1511_v12 = vsel %vm328_vm3, %v1509_v7, %v2184_v62 }
 0xecc   :  { %v2187_v5 = vpop.permute.xlu1 %2186  ;;  %v1520_v6 = vpop.permute.xlu0 %1519 }
 0xecd   :  { %v2189_v9 = vunpack.i.h.bf16 %v2187_v5  ;;  %v2188_v10 = vunpack.i.l.bf16 %v2187_v5  ;;  %2122 = vmatpush3.bf16.msra.mxu0 %v1520_v6 }
 0xece   :  { %2135 = vmatprep.subr.bf16.mxu0 %v2312_v0 }
 0xecf   :  { %v1513_v18 = vsel %vm637_vm4, %v1511_v12, %v2189_v9  ;;  %v1512_v16 = vsel %vm637_vm4, %v1510_v11, %v2188_v10 }
 0xed0   :  { %v1514_v20 = vpack.c.bf16 %v1513_v18, %v1512_v16 }
 0xed2   :  { %2124 = vmatmul.mubr.msk.bf16.vlgmr.msra.gmra.mxu0 %vm79_vm1, %v1514_v20 }
 0xed3   :  { %2143 = vmatprep.mubr.msk.bf16.mxu0 %vm2313_vm0, %v2312_v0  ;;  %2136 = vmatpush3.bf16.msra.mxu0 %v2202_v37 }
 0xed4   :  { %2137 = vmatprep.subr.bf16.mxu0 %v2312_v0 }
 0xed7   :  { %2138 = vmatpush3.bf16.msra.mxu0 %v2203_v57 }
 0xed8   :  { %2139 = vmatprep.subr.bf16.mxu0 %v2312_v0 }
 0xedb   :  { %2140 = vmatpush3.bf16.msra.mxu0 %v2204_v58 }
 0xedc   :  { %2141 = vmatprep.subr.bf16.mxu0 %v2312_v0 }
 0xedf   :  { %2142 = vmatpush3.bf16.msra.mxu0 %v2205_v59 }
 0xf92   :  { %v1562_v44 = vpop.f32.mrf.mxu0 }
 0xf93   :  { %v1563_v45 = vadd.f32 %v1901_v43, %v1562_v44 }
 0xf94   :  { %v2125_v17 = vpop.f32.mrf.mxu0 }
 0xf95   :  { %v1569_v21 = vadd.f32 %v1563_v45, %v2599_v32 }
 0xf96   :  { %v1565_v3 = vpop.f32.mrf.mxu0 }
 0xf97   :  { %v1566_v22 = vadd.f32 %v1901_v43, %v1565_v3  ;;  %v1571_v23 = vsel %vm79_vm1, %v1569_v21, 0.0 }
 0xf98   :  { %1572 = vadd.xlane.f32.xlu1 %v1571_v23  ;;  %v2126_v4 = vpop.f32.mrf.mxu0 }
 0xf99   :  { %v1570_v13 = vadd.f32 %v1566_v22, %v2601_v33  ;;  %v2200_v33 = vld [vmem:[%s2796_s2 + $0x34] ss:$8 sps:$4 sm:$0xff]  }
 0xf9a   :  { %2128 = vmatpush3.bf16.msra.mxu1 %v2200_v33 }
 0xf9b   :  { %v1574_v24 = vsel %vm79_vm1, %v1570_v13, 0.0  ;;  %2129 = vmatprep.subr.bf16.mxu1 %v2312_v0  ;;  %v1909_v0 = vld [vmem:[%s2798_s4 + $0xb] ss:$0 sm:$0xff] }
 0xf9c   :  { %1575 = vadd.xlane.f32.xlu0 %v1574_v24 }
 0xf9e   :  { %2130 = vmatpush3.bf16.msra.mxu1 %v2201_v36 }
0x1021   :  { %v1573_v25 = vpop.xlane.xlu1 %1572 }
0x1022   :  { %v1577_v26 = vmul.f32 0.03125, %v1573_v25 }
0x1024   :  { %v1579_v27 = vsub.f32 %v1569_v21, %v1577_v26 }
0x1025   :  { %v1576_v31 = vpop.xlane.xlu0 %1575 }
0x1026   :  { %v1578_v28 = vmul.f32 0.03125, %v1576_v31  ;;  %v1581_v29 = vmul.f32 %v1579_v27, %v1579_v27 }
0x1028   :  { %v1580_v30 = vsub.f32 %v1570_v13, %v1578_v28  ;;  %v1583_v32 = vsel %vm79_vm1, %v1581_v29, 0.0 }
0x1029   :  { %1584 = vadd.xlane.f32.xlu0 %v1583_v32  ;;  %v1915_v32 = vld [vmem:[%s2798_s4 + $0xe] ss:$0 sm:$0xff] }
0x102a   :  { %v1582_v34 = vmul.f32 %v1580_v30, %v1580_v30 }
0x102c   :  { %v1586_v35 = vsel %vm79_vm1, %v1582_v34, 0.0 }
0x102d   :  { %1587 = vadd.xlane.f32.xlu1 %v1586_v35  ;;  %v1916_v35 = vld [vmem:[%s2798_s4 + $0xf] ss:$0 sm:$0xff] }
0x10b2   :  { %v1585_v38 = vpop.xlane.xlu0 %1584 }
0x10b3   :  { %v1589_v39 = vmul.f32 0.03125, %v1585_v38 }
0x10b5   :  { %v1591_v40 = vadd.f32 1e-05, %v1589_v39 }
0x10b6   :  { %v1588_v1 = vpop.xlane.xlu1 %1587 }
0x10b7   :  { %2278 = vrsqrt.f32 %v1591_v40  ;;  %v1590_v41 = vmul.f32 0.03125, %v1588_v1 }
0x10b9   :  { %v1592_v42 = vadd.f32 1e-05, %v1590_v41 }
0x10bb   :  { %2280 = vrsqrt.f32 %v1592_v42 }
0x10c4   :  { %v2279_v46 = vpop.eup %2278 }
0x10c5   :  { %v1595_v47 = vmul.f32 %v2279_v46, %v1579_v27 }
0x10c7   :  { %v1601_v51 = vmul.f32 %v1903_v48, %v1595_v47 }
0x10c8   :  { %v2281_v49 = vpop.eup %2280 }
0x10c9   :  { %v1596_v50 = vmul.f32 %v2281_v49, %v1580_v30  ;;  %v1607_v54 = vadd.f32 %v1904_v52, %v1601_v51 }
0x10cb   :  { %v1602_v53 = vmul.f32 %v1903_v48, %v1596_v50 }
0x10cd   :  { %v1608_v55 = vadd.f32 %v1904_v52, %v1602_v53 }
0x10cf   :  { %v1609_v56 = vpack.c.bf16 %v1608_v55, %v1607_v54 }
0x10d1   :  { %2132 = vmatmul.mubr.msk.bf16.vlgmr.msra.gmra.mxu1 %vm79_vm1, %v1609_v56 }
0x1191   :  { %v1663_v19 = vpop.f32.mrf.mxu1 }
0x1192   :  { %v1664_v60 = vadd.f32 %v1905_v2, %v1663_v19 }
0x1193   :  { %v2133_v14 = vpop.f32.mrf.mxu1 }
0x1194   :  { %v1670_v63 = vmax.f32 %v1664_v60, 0.0  ;;  %v1917_v14 = vld [vmem:[%s2798_s4 + $0x10] ss:$0 sm:$0xff] }
0x1195   :  { %v1666_v15 = vpop.f32.mrf.mxu1 }
0x1196   :  { %v1667_v61 = vadd.f32 %v1905_v2, %v1666_v15  ;;  %v1918_v15 = vld [vmem:[%s2798_s4 + $0x11] ss:$0 sm:$0xff] }
0x1197   :  { %v2134_v62 = vpop.f32.mrf.mxu1 }
0x1198   :  { %v1671_v5 = vmax.f32 %v1667_v61, 0.0 }
0x119a   :  { %v1672_v6 = vpack.c.bf16 %v1671_v5, %v1670_v63 }
0x119c   :  { %2144 = vmatmul.mubr.msk.bf16.vlgmr.msra.gmra.mxu0 %vm828_vm5, %v1672_v6 }
0x125c   :  { %v1738_v7 = vpop.f32.mrf.mxu0 }
0x125d   :  { %v1739_v8 = vadd.f32 %v1909_v0, %v1738_v7 }
0x125e   :  { %v2145_v9 = vpop.f32.mrf.mxu0 }
0x125f   :  { %v1745_v10 = vadd.f32 %v1739_v8, %v1607_v54 }
0x1260   :  { %v1741_v11 = vpop.f32.mrf.mxu0 }
0x1261   :  { %v1742_v12 = vadd.f32 %v1909_v0, %v1741_v11  ;;  %v1747_v18 = vsel %vm79_vm1, %v1745_v10, 0.0 }
0x1262   :  { %1748 = vadd.xlane.f32.xlu0 %v1747_v18  ;;  %v2146_v16 = vpop.f32.mrf.mxu0 }
0x1263   :  { %v1746_v20 = vadd.f32 %v1742_v12, %v1608_v55 }
0x1265   :  { %v1750_v43 = vsel %vm79_vm1, %v1746_v20, 0.0 }
0x1266   :  { %1751 = vadd.xlane.f32.xlu1 %v1750_v43 }
0x12eb   :  { %v1749_v44 = vpop.xlane.xlu0 %1748 }
0x12ec   :  { %v1753_v45 = vmul.f32 0.03125, %v1749_v44 }
0x12ee   :  { %v1755_v17 = vsub.f32 %v1745_v10, %v1753_v45 }
0x12ef   :  { %v1752_v21 = vpop.xlane.xlu1 %1751 }
0x12f0   :  { %v1754_v3 = vmul.f32 0.03125, %v1752_v21  ;;  %v1757_v22 = vmul.f32 %v1755_v17, %v1755_v17 }
0x12f2   :  { %v1756_v23 = vsub.f32 %v1746_v20, %v1754_v3  ;;  %v1759_v4 = vsel %vm79_vm1, %v1757_v22, 0.0 }
0x12f3   :  { %1760 = vadd.xlane.f32.xlu0 %v1759_v4 }
0x12f4   :  { %v1758_v13 = vmul.f32 %v1756_v23, %v1756_v23 }
0x12f6   :  { %v1762_v24 = vsel %vm79_vm1, %v1758_v13, 0.0 }
0x12f7   :  { %1763 = vadd.xlane.f32.xlu1 %v1762_v24 }
0x137c   :  { %v1761_v25 = vpop.xlane.xlu0 %1760 }
0x137d   :  { %v1765_v26 = vmul.f32 0.03125, %v1761_v25 }
0x137f   :  { %v1767_v27 = vadd.f32 1e-05, %v1765_v26 }
0x1380   :  { %v1764_v31 = vpop.xlane.xlu1 %1763 }
0x1381   :  { %2282 = vrsqrt.f32 %v1767_v27  ;;  %v1766_v28 = vmul.f32 0.03125, %v1764_v31 }
0x1383   :  { %v1768_v29 = vadd.f32 1e-05, %v1766_v28 }
0x1385   :  { %2284 = vrsqrt.f32 %v1768_v29 }
0x138e   :  { %v2283_v30 = vpop.eup %2282 }
0x138f   :  { %v1771_v34 = vmul.f32 %v2283_v30, %v1755_v17 }
0x1391   :  { %v1777_v33 = vmul.f32 %v1915_v32, %v1771_v34 }
0x1392   :  { %v2285_v36 = vpop.eup %2284 }
0x1393   :  { %v1783_v37 = vadd.f32 %v1916_v35, %v1777_v33  ;;  %v1772_v38 = vmul.f32 %v2285_v36, %v1756_v23 }
0x1395   :  { %v1787_v39 = vsel %vm79_vm1, %v1783_v37, 0.0  ;;  %v1778_v40 = vmul.f32 %v1915_v32, %v1772_v38 }
0x1396   :  { %1788 = vadd.xlane.f32.xlu0 %v1787_v39 }
0x1397   :  { %v1784_v1 = vadd.f32 %v1916_v35, %v1778_v40 }
0x1399   :  { %v1790_v41 = vsel %vm79_vm1, %v1784_v1, 0.0 }
0x139a   :  { %1791 = vadd.xlane.f32.xlu1 %v1790_v41 }
0x141f   :  { %v1789_v42 = vpop.xlane.xlu0 %1788 }
0x1420   :  { %v1793_v46 = vmul.f32 0.03125, %v1789_v42 }
0x1422   :  { %v1795_v47 = vsub.f32 %v1783_v37, %v1793_v46 }
0x1423   :  { %v1792_v48 = vpop.xlane.xlu1 %1791 }
0x1424   :  { %v1794_v49 = vmul.f32 0.03125, %v1792_v48  ;;  %v1797_v50 = vmul.f32 %v1795_v47, %v1795_v47 }
0x1426   :  { %v1796_v51 = vsub.f32 %v1784_v1, %v1794_v49  ;;  %v1799_v52 = vsel %vm79_vm1, %v1797_v50, 0.0 }
0x1427   :  { %1800 = vadd.xlane.f32.xlu0 %v1799_v52 }
0x1428   :  { %v1798_v53 = vmul.f32 %v1796_v51, %v1796_v51 }
0x142a   :  { %v1802_v54 = vsel %vm79_vm1, %v1798_v53, 0.0 }
0x142b   :  { %1803 = vadd.xlane.f32.xlu1 %v1802_v54 }
0x14b0   :  { %v1801_v55 = vpop.xlane.xlu0 %1800 }
0x14b1   :  { %v1805_v56 = vmul.f32 0.03125, %v1801_v55 }
0x14b3   :  { %v1807_v57 = vadd.f32 1e-05, %v1805_v56 }
0x14b4   :  { %v1804_v58 = vpop.xlane.xlu1 %1803 }
0x14b5   :  { %2286 = vrsqrt.f32 %v1807_v57  ;;  %v1806_v59 = vmul.f32 0.03125, %v1804_v58 }
0x14b7   :  { %v1808_v2 = vadd.f32 1e-05, %v1806_v59 }
0x14b9   :  { %2288 = vrsqrt.f32 %v1808_v2 }
0x14c2   :  { %v2287_v19 = vpop.eup %2286 }
0x14c3   :  { %v1811_v60 = vmul.f32 %v2287_v19, %v1795_v47 }
0x14c5   :  { %v1817_v61 = vmul.f32 %v1917_v14, %v1811_v60 }
0x14c6   :  { %v2289_v62 = vpop.eup %2288 }
0x14c7   :  { %v1812_v63 = vmul.f32 %v2289_v62, %v1796_v51  ;;  %v1823_v5 = vadd.f32 %v1918_v15, %v1817_v61 }
0x14c9   :  { %v1818_v6 = vmul.f32 %v1917_v14, %v1812_v63  ;;  %1825 = vst.msk [vmem:[#allocation2] sm:$0xff] %vm79_vm1, %v1823_v5 }
0x14cb   :  { %v1824_v0 = vadd.f32 %v1918_v15, %v1818_v6 }
0x14cd   :  { %1826 = vst.msk [vmem:[#allocation2 + $0x8] sm:$0xff] %vm79_vm1, %v1824_v0 }
0x14ce   :  { %2301 = shalt.err (!%p2298_p4)
}
0x14cf   :  { %s2324_s4 = smov 128  }
0x14d0   :  { %1838 = dma.vmem_to_hbm [thread:$0]  %s1833_s30, 256, %s2799_s5, [#allocation3], %s2324_s4, %s2324_s4, %s2318_s10  }
0x14d1   :  { %2310 = dma.done.wait [#allocation3], 256  }
0x14d2   :  { %2311 = vsyncadd [#allocation3], 4294967040 }
0x14d3   :  { %1842 = vsyncpa [#allocation3], 1 }

</bundles_post_ra>
